<compile_context>
chip_gen: v7x
topology: tpu7x:2x2x1
jax: 0.10.0
libtpu: 0.0.40
codegen_flags: <defaults>
</compile_context>

<pallas_src>
import functools

import jax
import jax.numpy as jnp
from jax.experimental import pallas as pl
from jax.experimental.pallas import tpu as pltpu


def pool_conv_stats_kernel(x_ref, w_ref, y_ref, stats_ref):
    # x_ref     : (1, H, W, Cin)  f32   one NHWC image
    # w_ref     : (9, Cin, Cp)    bf16  conv weight per tap, Cout zero-padded to Cp
    # y_ref     : (Mn, Cp)        f32   conv output rows for this image (lane-dense)
    # stats_ref : (1, 2, Cp)      f32   [per-channel sum, per-channel sum of squares]
    _, h, w, cin = x_ref.shape
    hp, wp = h // 2, w // 2
    mn = hp * wp
    cp = w_ref.shape[-1]

    # ---- MaxPool2d(kernel=2, stride=2), fused ----
    x = x_ref[0].reshape(hp, 2, wp, 2, cin)
    pooled = jnp.maximum(
        jnp.maximum(x[:, 0, :, 0, :], x[:, 0, :, 1, :]),
        jnp.maximum(x[:, 1, :, 0, :], x[:, 1, :, 1, :]))            # (hp, wp, cin) f32

    # ---- Conv2d(3x3, padding=1, bias=False): nine accumulated MXU dots ----
    # bf16 operands (native MXU path on v5e/v6e/v7x), f32 accumulation.
    padded = jnp.pad(pooled, ((1, 1), (1, 1), (0, 0))).astype(jnp.bfloat16)
    acc = jnp.zeros((mn, cp), jnp.float32)
    for dh in range(3):
        for dw in range(3):
            tap = padded[dh:dh + hp, dw:dw + wp, :].reshape(mn, cin)
            acc += jnp.dot(tap, w_ref[dh * 3 + dw],
                           preferred_element_type=jnp.float32)

    y_ref[...] = acc                                                # lane-dense f32 store

    # ---- per-channel partial BN stats (sum, sum of squares) via the MXU ----
    ones = jnp.ones((1, mn), jnp.float32)
    ssum = jnp.dot(ones, acc, preferred_element_type=jnp.float32)        # (1, cp)
    ssq = jnp.dot(ones, acc * acc, preferred_element_type=jnp.float32)   # (1, cp)
    stats_ref[...] = jnp.concatenate([ssum, ssq], axis=0)[None]          # (1, 2, cp)


def bn_relu_kernel(y_ref, scale_ref, shift_ref, o_ref):
    # out = max(conv * scale + shift, 0); scale/shift hold the folded BN affine (f32).
    o_ref[...] = jnp.maximum(y_ref[...] * scale_ref[...] + shift_ref[...], 0.0)


def _vmem_capacity_bytes():
    try:
        return int(pltpu.get_tpu_info().vmem_capacity_bytes)
    except Exception:
        return 64 * 1024 * 1024            # conservative (v7x-sized) fallback


def _tile_pad_bytes(shape, dtype_bytes):
    s = list(shape)
    if len(s) >= 2:
        s[-2] = -(-s[-2] // 8) * 8
    s[-1] = -(-s[-1] // 128) * 128
    n = 1
    for d in s:
        n *= d
    return dtype_bytes * n


def _largest_row_tile(m, cap=512):
    best = 8
    for t in range(8, min(m, cap) + 1, 8):
        if m % t == 0:
            best = t
    return best


@functools.partial(jax.jit, static_argnames=("eps",))
def down_forward(x_nchw, w_oihw, gamma, beta, eps=1e-5):
    N, Cin, H, W = x_nchw.shape
    Cout = w_oihw.shape[0]
    assert H % 2 == 0 and W % 2 == 0, "fused 2x2 pool assumes even H, W"
    Hp, Wp = H // 2, W // 2
    Mn = Hp * Wp
    M = N * Mn
    assert Mn % 8 == 0, "Hp*Wp must be a multiple of 8"  # TODO(synk): pad rows otherwise
    Cp = ((Cout + 127) // 128) * 128                     # lane-dense padded out channels

    # Glue is layout prep only (transpose / reshape / pad / cast) -- no compute.
    x = jnp.transpose(x_nchw, (0, 2, 3, 1)).astype(jnp.float32)            # NHWC
    w = jnp.transpose(w_oihw, (2, 3, 1, 0)).reshape(9, Cin, Cout)          # (tap, Cin, Cout)
    w = jnp.pad(w, ((0, 0), (0, 0), (0, Cp - Cout))).astype(jnp.bfloat16)  # bf16 MXU operand

    # Per-generation VMEM budget: ~3/4 of physical (v7x 64 MiB -> 48, v5e/v6e 128 -> 96).
    vmem_limit = min((_vmem_capacity_bytes() * 3) // 4, 96 * 1024 * 1024)

    # Rough per-step VMEM of kernel 1 (double-buffered blocks + in-kernel temporaries).
    vmem_est = (2 * _tile_pad_bytes((1, H, W, Cin), 4)
                + 2 * _tile_pad_bytes((9, Cin, Cp), 2)
                + 2 * _tile_pad_bytes((Mn, Cp), 4)
                + 2 * _tile_pad_bytes((1, 2, Cp), 4)
                + 4 * _tile_pad_bytes((Mn, Cp), 4)
                + 3 * _tile_pad_bytes((Hp + 2, Wp + 2, Cin), 4))
    assert vmem_est < vmem_limit, (
        "per-image block of the fused Down kernel exceeds the VMEM budget; "
        "tile over pooled rows with a halo instead")   # TODO(synk): row-halo tiling

    # ---- kernel 1: pool + conv + partial BN stats, pipelined & parallel over batch ----
    conv, stats = pl.pallas_call(
        pool_conv_stats_kernel,
        out_shape=(jax.ShapeDtypeStruct((M, Cp), jnp.float32),
                   jax.ShapeDtypeStruct((N, 2, Cp), jnp.float32)),
        grid_spec=pltpu.PrefetchScalarGridSpec(
            num_scalar_prefetch=0,
            grid=(N,),
            in_specs=[
                pl.BlockSpec((1, H, W, Cin), lambda n: (n, 0, 0, 0)),
                pl.BlockSpec((9, Cin, Cp), lambda n: (0, 0, 0)),  # weights stay resident
            ],
            out_specs=[
                pl.BlockSpec((Mn, Cp), lambda n: (n, 0)),
                pl.BlockSpec((1, 2, Cp), lambda n: (n, 0, 0)),
            ]),
        compiler_params=pltpu.CompilerParams(
            dimension_semantics=("parallel",),            # megacore split on v7x
            vmem_limit_bytes=vmem_limit),
    )(x, w)

    # ---- O(Cp) glue: combine partial stats, fold BN into per-channel scale/shift ----
    ssum = jnp.sum(stats[:, 0, :], axis=0)
    ssq = jnp.sum(stats[:, 1, :], axis=0)
    mean = ssum / M
    var = jnp.maximum(ssq / M - mean * mean, 0.0)         # biased variance (training BN)
    gp = jnp.pad(gamma.astype(jnp.float32), (0, Cp - Cout))
    bp = jnp.pad(beta.astype(jnp.float32), (0, Cp - Cout))
    inv = jax.lax.rsqrt(var + eps)
    scale = (gp * inv).reshape(1, Cp)
    shift = (bp - mean * gp * inv).reshape(1, Cp)

    # ---- kernel 2: lane-dense, M-tiled BN + ReLU apply ----
    TM = _largest_row_tile(M, cap=512)
    y2d = pl.pallas_call(
        bn_relu_kernel,
        out_shape=jax.ShapeDtypeStruct((M, Cp), jnp.float32),
        grid_spec=pltpu.PrefetchScalarGridSpec(
            num_scalar_prefetch=0,
            grid=(M // TM,),
            in_specs=[
                pl.BlockSpec((TM, Cp), lambda i: (i, 0)),
                pl.BlockSpec((1, Cp), lambda i: (0, 0)),
                pl.BlockSpec((1, Cp), lambda i: (0, 0)),
            ],
            out_specs=pl.BlockSpec((TM, Cp), lambda i: (i, 0))),
        compiler_params=pltpu.CompilerParams(
            dimension_semantics=("parallel",),
            vmem_limit_bytes=vmem_limit),
    )(conv, scale, shift)

    out = y2d[:, :Cout].reshape(N, Hp, Wp, Cout)          # drop channel padding
    return jnp.transpose(out, (0, 3, 1, 2))               # back to NCHW


def down_reference(x, w, gamma, beta, eps=1e-5):
    """Pure-JAX f32 reference of the PyTorch forward (training-mode BN)."""
    N, Cin, H, W = x.shape
    pooled = x.reshape(N, Cin, H // 2, 2, W // 2, 2).max(axis=(3, 5))
    conv = jax.lax.conv_general_dilated(
        pooled, w, window_strides=(1, 1), padding=((1, 1), (1, 1)),
        dimension_numbers=("NCHW", "OIHW", "NCHW"))
    mean = conv.mean(axis=(0, 2, 3), keepdims=True)
    var = conv.var(axis=(0, 2, 3), keepdims=True)         # biased
    y = (conv - mean) / jnp.sqrt(var + eps)
    y = y * gamma.reshape(1, -1, 1, 1) + beta.reshape(1, -1, 1, 1)
    return jnp.maximum(y, 0.0)


if __name__ == "__main__":
    key = jax.random.PRNGKey(0)
    k_x, k_w, k_g, k_b = jax.random.split(key, 4)

    N, Cin, Cout, H, W = 2, 4, 8, 16, 16

    x = jax.random.normal(k_x, (N, Cin, H, W), dtype=jnp.float32)
    # Conv2d(4, 8, kernel_size=3, bias=False) -> weight (Cout, Cin, 3, 3)
    w = jax.random.normal(k_w, (Cout, Cin, 3, 3), dtype=jnp.float32) * (1.0 / (Cin * 9) ** 0.5)
    # BatchNorm2d(out_channels) affine params (deterministic, non-trivial)
    gamma = 1.0 + 0.1 * jax.random.normal(k_g, (Cout,), dtype=jnp.float32)
    beta = 0.1 * jax.random.normal(k_b, (Cout,), dtype=jnp.float32)

    out = jax.block_until_ready(down_forward(x, w, gamma, beta))
    ref = jax.block_until_ready(down_reference(x, w, gamma, beta))

    assert out.shape == (N, Cout, H // 2, W // 2), out.shape
    # bf16 MXU operands (f32 accumulation) vs an all-f32 reference -> 2e-2 tolerance.
    max_err = float(jnp.max(jnp.abs(out - ref)))
    assert jnp.allclose(out, ref, rtol=2e-2, atol=2e-2), max_err
    print("KERNEL_OK")
</pallas_src>

<mosaic_0001>
module attributes {stable_mosaic.version = 11 : i64} {
  func.func @pool_conv_stats_kernel(%arg0: i32, %arg1: memref<1x16x16x4xf32, #tpu.memory_space<vmem>>, %arg2: memref<9x4x128xbf16, #tpu.memory_space<vmem>>, %arg3: memref<64x128xf32, #tpu.memory_space<vmem>>, %arg4: memref<1x2x128xf32, #tpu.memory_space<vmem>>) attributes {dimension_semantics = [#tpu.dimension_semantics<parallel>], iteration_bounds = array<i64: 2>, scalar_prefetch = 0 : i64, scratch_operands = 0 : i64, tpu.core_type = #tpu.core_type<tc>, window_params = [{transform_indices = @transform_0, window_bounds = array<i64: 1, 16, 16, 4>}, {pipeline_mode = #tpu.pipeline_mode<synchronous>, transform_indices = @transform_1, window_bounds = array<i64: 9, 4, 128>}, {transform_indices = @transform_2, window_bounds = array<i64: 64, 128>}, {transform_indices = @transform_3, window_bounds = array<i64: 1, 2, 128>}]} {
    %c0 = arith.constant 0 : index
    %c0_0 = arith.constant 0 : index
    %c0_1 = arith.constant 0 : index
    %c0_2 = arith.constant 0 : index
    %0 = vector.load %arg1[%c0, %c0_0, %c0_1, %c0_2] : memref<1x16x16x4xf32, #tpu.memory_space<vmem>>, vector<1x16x16x4xf32>
    %1 = vector.shape_cast %0 : vector<1x16x16x4xf32> to vector<16x16x4xf32>
    %2 = vector.shape_cast %1 : vector<16x16x4xf32> to vector<8x2x8x2x4xf32>
    %3 = vector.extract_strided_slice %2 {offsets = [0, 0, 0, 0, 0], sizes = [8, 1, 8, 1, 4], strides = [1, 1, 1, 1, 1]} : vector<8x2x8x2x4xf32> to vector<8x1x8x1x4xf32>
    %4 = vector.shape_cast %3 : vector<8x1x8x1x4xf32> to vector<8x8x4xf32>
    %5 = vector.extract_strided_slice %2 {offsets = [0, 0, 0, 1, 0], sizes = [8, 1, 8, 1, 4], strides = [1, 1, 1, 1, 1]} : vector<8x2x8x2x4xf32> to vector<8x1x8x1x4xf32>
    %6 = vector.shape_cast %5 : vector<8x1x8x1x4xf32> to vector<8x8x4xf32>
    %7 = arith.maximumf %4, %6 : vector<8x8x4xf32>
    %8 = vector.extract_strided_slice %2 {offsets = [0, 1, 0, 0, 0], sizes = [8, 1, 8, 1, 4], strides = [1, 1, 1, 1, 1]} : vector<8x2x8x2x4xf32> to vector<8x1x8x1x4xf32>
    %9 = vector.shape_cast %8 : vector<8x1x8x1x4xf32> to vector<8x8x4xf32>
    %10 = vector.extract_strided_slice %2 {offsets = [0, 1, 0, 1, 0], sizes = [8, 1, 8, 1, 4], strides = [1, 1, 1, 1, 1]} : vector<8x2x8x2x4xf32> to vector<8x1x8x1x4xf32>
    %11 = vector.shape_cast %10 : vector<8x1x8x1x4xf32> to vector<8x8x4xf32>
    %12 = arith.maximumf %9, %11 : vector<8x8x4xf32>
    %13 = arith.maximumf %7, %12 : vector<8x8x4xf32>
    %c0_i32 = arith.constant 0 : i32
    %14 = arith.sitofp %c0_i32 : i32 to f32
    %15 = vector.broadcast %14 : f32 to vector<1x8x4xf32>
    %16 = tpu.concatenate %15, %13 in 0 : vector<1x8x4xf32>, vector<8x8x4xf32> -> vector<9x8x4xf32>
    %17 = vector.broadcast %14 : f32 to vector<1x8x4xf32>
    %18 = tpu.concatenate %16, %17 in 0 : vector<9x8x4xf32>, vector<1x8x4xf32> -> vector<10x8x4xf32>
    %19 = vector.broadcast %14 : f32 to vector<10x1x4xf32>
    %20 = tpu.concatenate %19, %18 in 1 : vector<10x1x4xf32>, vector<10x8x4xf32> -> vector<10x9x4xf32>
    %21 = vector.broadcast %14 : f32 to vector<10x1x4xf32>
    %22 = tpu.concatenate %20, %21 in 1 : vector<10x9x4xf32>, vector<10x1x4xf32> -> vector<10x10x4xf32>
    %23 = arith.truncf %22 : vector<10x10x4xf32> to vector<10x10x4xbf16>
    %cst = arith.constant 0.000000e+00 : f32
    %24 = vector.broadcast %cst : f32 to vector<64x128xf32>
    %25 = vector.extract_strided_slice %23 {offsets = [0, 0, 0], sizes = [8, 8, 4], strides = [1, 1, 1]} : vector<10x10x4xbf16> to vector<8x8x4xbf16>
    %26 = vector.shape_cast %25 : vector<8x8x4xbf16> to vector<64x4xbf16>
    %c0_3 = arith.constant 0 : index
    %c0_4 = arith.constant 0 : index
    %c0_5 = arith.constant 0 : index
    %27 = vector.load %arg2[%c0_3, %c0_4, %c0_5] : memref<9x4x128xbf16, #tpu.memory_space<vmem>>, vector<1x4x128xbf16>
    %28 = vector.shape_cast %27 : vector<1x4x128xbf16> to vector<4x128xbf16>
    %cst_6 = arith.constant dense<0.000000e+00> : vector<64x128xf32>
    %29 = tpu.matmul %26, %28, %cst_6 {dimension_numbers = #tpu.dot_dimension_numbers<[1], [0], [0], [1], [0, 0, 1, 1], [], []>} : vector<64x4xbf16>, vector<4x128xbf16>, vector<64x128xf32> -> vector<64x128xf32>
    %30 = arith.addf %24, %29 : vector<64x128xf32>
    %31 = vector.extract_strided_slice %23 {offsets = [0, 1, 0], sizes = [8, 8, 4], strides = [1, 1, 1]} : vector<10x10x4xbf16> to vector<8x8x4xbf16>
    %32 = vector.shape_cast %31 : vector<8x8x4xbf16> to vector<64x4xbf16>
    %c1 = arith.constant 1 : index
    %c0_7 = arith.constant 0 : index
    %c0_8 = arith.constant 0 : index
    %33 = vector.load %arg2[%c1, %c0_7, %c0_8] : memref<9x4x128xbf16, #tpu.memory_space<vmem>>, vector<1x4x128xbf16>
    %34 = vector.shape_cast %33 : vector<1x4x128xbf16> to vector<4x128xbf16>
    %cst_9 = arith.constant dense<0.000000e+00> : vector<64x128xf32>
    %35 = tpu.matmul %32, %34, %cst_9 {dimension_numbers = #tpu.dot_dimension_numbers<[1], [0], [0], [1], [0, 0, 1, 1], [], []>} : vector<64x4xbf16>, vector<4x128xbf16>, vector<64x128xf32> -> vector<64x128xf32>
    %36 = arith.addf %30, %35 : vector<64x128xf32>
    %37 = vector.extract_strided_slice %23 {offsets = [0, 2, 0], sizes = [8, 8, 4], strides = [1, 1, 1]} : vector<10x10x4xbf16> to vector<8x8x4xbf16>
    %38 = vector.shape_cast %37 : vector<8x8x4xbf16> to vector<64x4xbf16>
    %c2 = arith.constant 2 : index
    %c0_10 = arith.constant 0 : index
    %c0_11 = arith.constant 0 : index
    %39 = vector.load %arg2[%c2, %c0_10, %c0_11] : memref<9x4x128xbf16, #tpu.memory_space<vmem>>, vector<1x4x128xbf16>
    %40 = vector.shape_cast %39 : vector<1x4x128xbf16> to vector<4x128xbf16>
    %cst_12 = arith.constant dense<0.000000e+00> : vector<64x128xf32>
    %41 = tpu.matmul %38, %40, %cst_12 {dimension_numbers = #tpu.dot_dimension_numbers<[1], [0], [0], [1], [0, 0, 1, 1], [], []>} : vector<64x4xbf16>, vector<4x128xbf16>, vector<64x128xf32> -> vector<64x128xf32>
    %42 = arith.addf %36, %41 : vector<64x128xf32>
    %43 = vector.extract_strided_slice %23 {offsets = [1, 0, 0], sizes = [8, 8, 4], strides = [1, 1, 1]} : vector<10x10x4xbf16> to vector<8x8x4xbf16>
    %44 = vector.shape_cast %43 : vector<8x8x4xbf16> to vector<64x4xbf16>
    %c3 = arith.constant 3 : index
    %c0_13 = arith.constant 0 : index
    %c0_14 = arith.constant 0 : index
    %45 = vector.load %arg2[%c3, %c0_13, %c0_14] : memref<9x4x128xbf16, #tpu.memory_space<vmem>>, vector<1x4x128xbf16>
    %46 = vector.shape_cast %45 : vector<1x4x128xbf16> to vector<4x128xbf16>
    %cst_15 = arith.constant dense<0.000000e+00> : vector<64x128xf32>
    %47 = tpu.matmul %44, %46, %cst_15 {dimension_numbers = #tpu.dot_dimension_numbers<[1], [0], [0], [1], [0, 0, 1, 1], [], []>} : vector<64x4xbf16>, vector<4x128xbf16>, vector<64x128xf32> -> vector<64x128xf32>
    %48 = arith.addf %42, %47 : vector<64x128xf32>
    %49 = vector.extract_strided_slice %23 {offsets = [1, 1, 0], sizes = [8, 8, 4], strides = [1, 1, 1]} : vector<10x10x4xbf16> to vector<8x8x4xbf16>
    %50 = vector.shape_cast %49 : vector<8x8x4xbf16> to vector<64x4xbf16>
    %c4 = arith.constant 4 : index
    %c0_16 = arith.constant 0 : index
    %c0_17 = arith.constant 0 : index
    %51 = vector.load %arg2[%c4, %c0_16, %c0_17] : memref<9x4x128xbf16, #tpu.memory_space<vmem>>, vector<1x4x128xbf16>
    %52 = vector.shape_cast %51 : vector<1x4x128xbf16> to vector<4x128xbf16>
    %cst_18 = arith.constant dense<0.000000e+00> : vector<64x128xf32>
    %53 = tpu.matmul %50, %52, %cst_18 {dimension_numbers = #tpu.dot_dimension_numbers<[1], [0], [0], [1], [0, 0, 1, 1], [], []>} : vector<64x4xbf16>, vector<4x128xbf16>, vector<64x128xf32> -> vector<64x128xf32>
    %54 = arith.addf %48, %53 : vector<64x128xf32>
    %55 = vector.extract_strided_slice %23 {offsets = [1, 2, 0], sizes = [8, 8, 4], strides = [1, 1, 1]} : vector<10x10x4xbf16> to vector<8x8x4xbf16>
    %56 = vector.shape_cast %55 : vector<8x8x4xbf16> to vector<64x4xbf16>
    %c5 = arith.constant 5 : index
    %c0_19 = arith.constant 0 : index
    %c0_20 = arith.constant 0 : index
    %57 = vector.load %arg2[%c5, %c0_19, %c0_20] : memref<9x4x128xbf16, #tpu.memory_space<vmem>>, vector<1x4x128xbf16>
    %58 = vector.shape_cast %57 : vector<1x4x128xbf16> to vector<4x128xbf16>
    %cst_21 = arith.constant dense<0.000000e+00> : vector<64x128xf32>
    %59 = tpu.matmul %56, %58, %cst_21 {dimension_numbers = #tpu.dot_dimension_numbers<[1], [0], [0], [1], [0, 0, 1, 1], [], []>} : vector<64x4xbf16>, vector<4x128xbf16>, vector<64x128xf32> -> vector<64x128xf32>
    %60 = arith.addf %54, %59 : vector<64x128xf32>
    %61 = vector.extract_strided_slice %23 {offsets = [2, 0, 0], sizes = [8, 8, 4], strides = [1, 1, 1]} : vector<10x10x4xbf16> to vector<8x8x4xbf16>
    %62 = vector.shape_cast %61 : vector<8x8x4xbf16> to vector<64x4xbf16>
    %c6 = arith.constant 6 : index
    %c0_22 = arith.constant 0 : index
    %c0_23 = arith.constant 0 : index
    %63 = vector.load %arg2[%c6, %c0_22, %c0_23] : memref<9x4x128xbf16, #tpu.memory_space<vmem>>, vector<1x4x128xbf16>
    %64 = vector.shape_cast %63 : vector<1x4x128xbf16> to vector<4x128xbf16>
    %cst_24 = arith.constant dense<0.000000e+00> : vector<64x128xf32>
    %65 = tpu.matmul %62, %64, %cst_24 {dimension_numbers = #tpu.dot_dimension_numbers<[1], [0], [0], [1], [0, 0, 1, 1], [], []>} : vector<64x4xbf16>, vector<4x128xbf16>, vector<64x128xf32> -> vector<64x128xf32>
    %66 = arith.addf %60, %65 : vector<64x128xf32>
    %67 = vector.extract_strided_slice %23 {offsets = [2, 1, 0], sizes = [8, 8, 4], strides = [1, 1, 1]} : vector<10x10x4xbf16> to vector<8x8x4xbf16>
    %68 = vector.shape_cast %67 : vector<8x8x4xbf16> to vector<64x4xbf16>
    %c7 = arith.constant 7 : index
    %c0_25 = arith.constant 0 : index
    %c0_26 = arith.constant 0 : index
    %69 = vector.load %arg2[%c7, %c0_25, %c0_26] : memref<9x4x128xbf16, #tpu.memory_space<vmem>>, vector<1x4x128xbf16>
    %70 = vector.shape_cast %69 : vector<1x4x128xbf16> to vector<4x128xbf16>
    %cst_27 = arith.constant dense<0.000000e+00> : vector<64x128xf32>
    %71 = tpu.matmul %68, %70, %cst_27 {dimension_numbers = #tpu.dot_dimension_numbers<[1], [0], [0], [1], [0, 0, 1, 1], [], []>} : vector<64x4xbf16>, vector<4x128xbf16>, vector<64x128xf32> -> vector<64x128xf32>
    %72 = arith.addf %66, %71 : vector<64x128xf32>
    %73 = vector.extract_strided_slice %23 {offsets = [2, 2, 0], sizes = [8, 8, 4], strides = [1, 1, 1]} : vector<10x10x4xbf16> to vector<8x8x4xbf16>
    %74 = vector.shape_cast %73 : vector<8x8x4xbf16> to vector<64x4xbf16>
    %c8 = arith.constant 8 : index
    %c0_28 = arith.constant 0 : index
    %c0_29 = arith.constant 0 : index
    %75 = vector.load %arg2[%c8, %c0_28, %c0_29] : memref<9x4x128xbf16, #tpu.memory_space<vmem>>, vector<1x4x128xbf16>
    %76 = vector.shape_cast %75 : vector<1x4x128xbf16> to vector<4x128xbf16>
    %cst_30 = arith.constant dense<0.000000e+00> : vector<64x128xf32>
    %77 = tpu.matmul %74, %76, %cst_30 {dimension_numbers = #tpu.dot_dimension_numbers<[1], [0], [0], [1], [0, 0, 1, 1], [], []>} : vector<64x4xbf16>, vector<4x128xbf16>, vector<64x128xf32> -> vector<64x128xf32>
    %78 = arith.addf %72, %77 : vector<64x128xf32>
    %c0_31 = arith.constant 0 : index
    %c0_32 = arith.constant 0 : index
    %79 = vector.load %arg3[%c0_31, %c0_32] : memref<64x128xf32, #tpu.memory_space<vmem>>, vector<64x128xf32>
    tpu.vector_store %arg3[%c0_31, %c0_32], %78 {strides = array<i32>} : memref<64x128xf32, #tpu.memory_space<vmem>>, vector<64x128xf32>,
    %cst_33 = arith.constant 1.000000e+00 : f32
    %80 = vector.broadcast %cst_33 : f32 to vector<1x64xf32>
    %cst_34 = arith.constant dense<0.000000e+00> : vector<1x128xf32>
    %81 = tpu.matmul %80, %78, %cst_34 {dimension_numbers = #tpu.dot_dimension_numbers<[1], [0], [0], [1], [0, 0, 1, 1], [], []>} : vector<1x64xf32>, vector<64x128xf32>, vector<1x128xf32> -> vector<1x128xf32>
    %82 = arith.mulf %78, %78 : vector<64x128xf32>
    %cst_35 = arith.constant dense<0.000000e+00> : vector<1x128xf32>
    %83 = tpu.matmul %80, %82, %cst_35 {dimension_numbers = #tpu.dot_dimension_numbers<[1], [0], [0], [1], [0, 0, 1, 1], [], []>} : vector<1x64xf32>, vector<64x128xf32>, vector<1x128xf32> -> vector<1x128xf32>
    %84 = tpu.concatenate %81, %83 in 0 : vector<1x128xf32>, vector<1x128xf32> -> vector<2x128xf32>
    %85 = vector.shape_cast %84 : vector<2x128xf32> to vector<1x2x128xf32>
    %c0_36 = arith.constant 0 : index
    %c0_37 = arith.constant 0 : index
    %c0_38 = arith.constant 0 : index
    %86 = vector.load %arg4[%c0_36, %c0_37, %c0_38] : memref<1x2x128xf32, #tpu.memory_space<vmem>>, vector<1x2x128xf32>
    tpu.vector_store %arg4[%c0_36, %c0_37, %c0_38], %85 {strides = array<i32>} : memref<1x2x128xf32, #tpu.memory_space<vmem>>, vector<1x2x128xf32>,
    return
  }
  func.func @transform_0(%arg0: i32) -> (i32, i32, i32, i32) {
    %c0_i32 = arith.constant 0 : i32
    %c0_i32_0 = arith.constant 0 : i32
    %c0_i32_1 = arith.constant 0 : i32
    %c0_i32_2 = arith.constant 0 : i32
    return %arg0, %c0_i32, %c0_i32_0, %c0_i32_1 : i32, i32, i32, i32
  }
  func.func @transform_1(%arg0: i32) -> (i32, i32, i32) {
    %c0_i32 = arith.constant 0 : i32
    %c0_i32_0 = arith.constant 0 : i32
    %c0_i32_1 = arith.constant 0 : i32
    %c0_i32_2 = arith.constant 0 : i32
    return %c0_i32, %c0_i32_0, %c0_i32_1 : i32, i32, i32
  }
  func.func @transform_2(%arg0: i32) -> (i32, i32) {
    %c0_i32 = arith.constant 0 : i32
    %c0_i32_0 = arith.constant 0 : i32
    return %arg0, %c0_i32 : i32, i32
  }
  func.func @transform_3(%arg0: i32) -> (i32, i32, i32) {
    %c0_i32 = arith.constant 0 : i32
    %c0_i32_0 = arith.constant 0 : i32
    %c0_i32_1 = arith.constant 0 : i32
    return %arg0, %c0_i32, %c0_i32_0 : i32, i32, i32
  }
}

module attributes {stable_mosaic.version = 11 : i64} {
  func.func @bn_relu_kernel(%arg0: i32, %arg1: memref<128x128xf32, #tpu.memory_space<vmem>>, %arg2: memref<1x128xf32, #tpu.memory_space<vmem>>, %arg3: memref<1x128xf32, #tpu.memory_space<vmem>>, %arg4: memref<128x128xf32, #tpu.memory_space<vmem>>) attributes {dimension_semantics = [#tpu.dimension_semantics<parallel>], iteration_bounds = array<i64: 1>, scalar_prefetch = 0 : i64, scratch_operands = 0 : i64, tpu.core_type = #tpu.core_type<tc>, window_params = [{transform_indices = @transform_0, window_bounds = array<i64: 128, 128>}, {pipeline_mode = #tpu.pipeline_mode<synchronous>, transform_indices = @transform_1, window_bounds = array<i64: 1, 128>}, {pipeline_mode = #tpu.pipeline_mode<synchronous>, transform_indices = @transform_2, window_bounds = array<i64: 1, 128>}, {transform_indices = @transform_3, window_bounds = array<i64: 128, 128>}]} {
    %c0 = arith.constant 0 : index
    %c0_0 = arith.constant 0 : index
    %0 = vector.load %arg1[%c0, %c0_0] : memref<128x128xf32, #tpu.memory_space<vmem>>, vector<128x128xf32>
    %c0_1 = arith.constant 0 : index
    %c0_2 = arith.constant 0 : index
    %1 = vector.load %arg2[%c0_1, %c0_2] : memref<1x128xf32, #tpu.memory_space<vmem>>, vector<1x128xf32>
    %2 = vector.broadcast %1 : vector<1x128xf32> to vector<128x128xf32>
    %3 = arith.mulf %0, %2 : vector<128x128xf32>
    %c0_3 = arith.constant 0 : index
    %c0_4 = arith.constant 0 : index
    %4 = vector.load %arg3[%c0_3, %c0_4] : memref<1x128xf32, #tpu.memory_space<vmem>>, vector<1x128xf32>
    %5 = vector.broadcast %4 : vector<1x128xf32> to vector<128x128xf32>
    %6 = arith.addf %3, %5 : vector<128x128xf32>
    %cst = arith.constant 0.000000e+00 : f32
    %7 = vector.broadcast %cst : f32 to vector<128x128xf32>
    %8 = arith.maximumf %6, %7 : vector<128x128xf32>
    %c0_5 = arith.constant 0 : index
    %c0_6 = arith.constant 0 : index
    %9 = vector.load %arg4[%c0_5, %c0_6] : memref<128x128xf32, #tpu.memory_space<vmem>>, vector<128x128xf32>
    tpu.vector_store %arg4[%c0_5, %c0_6], %8 {strides = array<i32>} : memref<128x128xf32, #tpu.memory_space<vmem>>, vector<128x128xf32>,
    return
  }
  func.func @transform_0(%arg0: i32) -> (i32, i32) {
    %c0_i32 = arith.constant 0 : i32
    %c0_i32_0 = arith.constant 0 : i32
    return %arg0, %c0_i32 : i32, i32
  }
  func.func @transform_1(%arg0: i32) -> (i32, i32) {
    %c0_i32 = arith.constant 0 : i32
    %c0_i32_0 = arith.constant 0 : i32
    %c0_i32_1 = arith.constant 0 : i32
    return %c0_i32, %c0_i32_0 : i32, i32
  }
  func.func @transform_2(%arg0: i32) -> (i32, i32) {
    %c0_i32 = arith.constant 0 : i32
    %c0_i32_0 = arith.constant 0 : i32
    %c0_i32_1 = arith.constant 0 : i32
    return %c0_i32, %c0_i32_0 : i32, i32
  }
  func.func @transform_3(%arg0: i32) -> (i32, i32) {
    %c0_i32 = arith.constant 0 : i32
    %c0_i32_0 = arith.constant 0 : i32
    return %arg0, %c0_i32 : i32, i32
  }
}

</mosaic_0001>

<bundles_post_ra>
// kernel: down_forward.3
= control target key start
LH: loop header
LB: loop body
LE: loop exit
PB: predicated region body
PF: predicated region fallthrough
CT: control target
= control target key end

     0   :  { %s254_s0 = inlined_call_operand.vmem [shape: f32[128,128], index: 0, kind: input, shape index: {}]   ;;  %s255_s1 = inlined_call_operand.vmem [shape: f32[1,128], index: 1, kind: input, shape index: {}]   ;;  %s256_s2 = inlined_call_operand.vmem [shape: f32[1,128], index: 2, kind: input, shape index: {}]   ;;  %s257_s3 = inlined_call_operand.vmem [shape: f32[128,128], index: 3, kind: output, shape index: {}]  }
   0x1   :  { %v14_v0 = vld [vmem:[%s254_s0] sm:$0xff]  ;;  %v15_v4 = vld [vmem:[%s254_s0 + $0x8] sm:$0xff]  ;;  %v16_v5 = vld [vmem:[%s254_s0 + $0x10] sm:$0xff] }
   0x2   :  { %v112_v1 = vld [vmem:[%s255_s1] ss:$0 sm:$0xff]  ;;  %v17_v6 = vld [vmem:[%s254_s0 + $0x18] sm:$0xff]  ;;  %v19_v11 = vld [vmem:[%s254_s0 + $0x28] sm:$0xff] }
   0x3   :  { %v143_v2 = vld [vmem:[%s256_s2] ss:$0 sm:$0xff]  ;;  %v37_v3 = vmul.f32 %v112_v1, %v14_v0  ;;  %v38_v7 = vmul.f32 %v112_v1, %v15_v4  ;;  %v39_v8 = vmul.f32 %v112_v1, %v16_v5  ;;  %v40_v9 = vmul.f32 %v112_v1, %v17_v6  ;;  %v20_v12 = vld [vmem:[%s254_s0 + $0x30] sm:$0xff]  ;;  %v21_v17 = vld [vmem:[%s254_s0 + $0x38] sm:$0xff] }
   0x4   :  { %v18_v10 = vld [vmem:[%s254_s0 + $0x20] sm:$0xff]  ;;  %v42_v15 = vmul.f32 %v112_v1, %v19_v11  ;;  %v43_v16 = vmul.f32 %v112_v1, %v20_v12  ;;  %v44_v21 = vmul.f32 %v112_v1, %v21_v17  ;;  %v23_v27 = vld [vmem:[%s254_s0 + $0x48] sm:$0xff]  ;;  %v24_v28 = vld [vmem:[%s254_s0 + $0x50] sm:$0xff] }
   0x5   :  { %v60_v13 = vadd.f32 %v143_v2, %v37_v3  ;;  %v41_v14 = vmul.f32 %v112_v1, %v18_v10  ;;  %v61_v18 = vadd.f32 %v143_v2, %v38_v7  ;;  %v62_v19 = vadd.f32 %v143_v2, %v39_v8  ;;  %v22_v22 = vld [vmem:[%s254_s0 + $0x40] sm:$0xff]  ;;  %v25_v29 = vld [vmem:[%s254_s0 + $0x58] sm:$0xff]  ;;  %v27_v35 = vld [vmem:[%s254_s0 + $0x68] sm:$0xff] }
   0x6   :  { %v63_v20 = vadd.f32 %v143_v2, %v40_v9  ;;  %v65_v25 = vadd.f32 %v143_v2, %v42_v15  ;;  %v66_v26 = vadd.f32 %v143_v2, %v43_v16  ;;  %v67_v33 = vadd.f32 %v143_v2, %v44_v21  ;;  %v26_v34 = vld [vmem:[%s254_s0 + $0x60] sm:$0xff]  ;;  %v28_v36 = vld [vmem:[%s254_s0 + $0x70] sm:$0xff]  ;;  %v29_v41 = vld [vmem:[%s254_s0 + $0x78] sm:$0xff] }
   0x7   :  { %v76_v23 = vmax.f32 %v60_v13, 0.0  ;;  %v64_v24 = vadd.f32 %v143_v2, %v41_v14  ;;  %v77_v30 = vmax.f32 %v61_v18, 0.0  ;;  %v78_v31 = vmax.f32 %v62_v19, 0.0 }
   0x8   :  { %v79_v32 = vmax.f32 %v63_v20, 0.0  ;;  %v81_v38 = vmax.f32 %v65_v25, 0.0  ;;  %v82_v39 = vmax.f32 %v66_v26, 0.0  ;;  %v45_v40 = vmul.f32 %v112_v1, %v22_v22 }
   0x9   :  { %92 = vst [vmem:[%s257_s3] sm:$0xff] %v76_v23  ;;  %v80_v37 = vmax.f32 %v64_v24, 0.0  ;;  %93 = vst [vmem:[%s257_s3 + $0x8] sm:$0xff] %v77_v30  ;;  %v83_v42 = vmax.f32 %v67_v33, 0.0  ;;  %v46_v43 = vmul.f32 %v112_v1, %v23_v27  ;;  %v47_v44 = vmul.f32 %v112_v1, %v24_v28 }
   0xa   :  { %94 = vst [vmem:[%s257_s3 + $0x10] sm:$0xff] %v78_v31  ;;  %95 = vst [vmem:[%s257_s3 + $0x18] sm:$0xff] %v79_v32  ;;  %v48_v45 = vmul.f32 %v112_v1, %v25_v29  ;;  %v68_v46 = vadd.f32 %v143_v2, %v45_v40  ;;  %v49_v47 = vmul.f32 %v112_v1, %v26_v34 }
   0xb   :  { %96 = vst [vmem:[%s257_s3 + $0x20] sm:$0xff] %v80_v37  ;;  %97 = vst [vmem:[%s257_s3 + $0x28] sm:$0xff] %v81_v38  ;;  %v50_v48 = vmul.f32 %v112_v1, %v27_v35  ;;  %v51_v49 = vmul.f32 %v112_v1, %v28_v36  ;;  %v69_v50 = vadd.f32 %v143_v2, %v46_v43 }
   0xc   :  { %98 = vst [vmem:[%s257_s3 + $0x30] sm:$0xff] %v82_v39  ;;  %99 = vst [vmem:[%s257_s3 + $0x38] sm:$0xff] %v83_v42  ;;  %v70_v51 = vadd.f32 %v143_v2, %v47_v44  ;;  %v71_v52 = vadd.f32 %v143_v2, %v48_v45  ;;  %v52_v53 = vmul.f32 %v112_v1, %v29_v41  ;;  %v84_v54 = vmax.f32 %v68_v46, 0.0 }
   0xd   :  { %v72_v55 = vadd.f32 %v143_v2, %v49_v47  ;;  %v73_v56 = vadd.f32 %v143_v2, %v50_v48  ;;  %v74_v57 = vadd.f32 %v143_v2, %v51_v49  ;;  %v85_v58 = vmax.f32 %v69_v50, 0.0 }
   0xe   :  { %v86_v59 = vmax.f32 %v70_v51, 0.0  ;;  %v87_v60 = vmax.f32 %v71_v52, 0.0  ;;  %v75_v61 = vadd.f32 %v143_v2, %v52_v53  ;;  %100 = vst [vmem:[%s257_s3 + $0x40] sm:$0xff] %v84_v54 }
   0xf   :  { %v88_v62 = vmax.f32 %v72_v55, 0.0  ;;  %v89_v63 = vmax.f32 %v73_v56, 0.0  ;;  %v90_v0 = vmax.f32 %v74_v57, 0.0  ;;  %101 = vst [vmem:[%s257_s3 + $0x48] sm:$0xff] %v85_v58 }
  0x10   :  { %102 = vst [vmem:[%s257_s3 + $0x50] sm:$0xff] %v86_v59  ;;  %103 = vst [vmem:[%s257_s3 + $0x58] sm:$0xff] %v87_v60  ;;  %v91_v1 = vmax.f32 %v75_v61, 0.0 }
  0x11   :  { %104 = vst [vmem:[%s257_s3 + $0x60] sm:$0xff] %v88_v62  ;;  %105 = vst [vmem:[%s257_s3 + $0x68] sm:$0xff] %v89_v63 }
  0x12   :  { %106 = vst [vmem:[%s257_s3 + $0x70] sm:$0xff] %v90_v0  ;;  %107 = vst [vmem:[%s257_s3 + $0x78] sm:$0xff] %v91_v1 }

// kernel: down_forward.2
= control target key start
LH: loop header
LB: loop body
LE: loop exit
PB: predicated region body
PF: predicated region fallthrough
CT: control target
= control target key end

     0   :  { %s3838_s12 = smov 0   ;;  %s5068_s0 = inlined_call_operand.vmem [shape: f32[2,16,16,4], index: 0, kind: input, shape index: {}]   ;;  %s5069_s1 = inlined_call_operand.vmem [shape: bf16[9,4,128], index: 1, kind: input, shape index: {}]   ;;  %s5070_s2 = inlined_call_operand.vmem [shape: f32[128,128], index: 2, kind: output, shape index: {0}]   ;;  %s5071_s3 = inlined_call_operand.vmem [shape: f32[2,2,128], index: 3, kind: output, shape index: {1}]  }
   0x1 LB: > { %s3844_s13 = sadd.s32 4294967295, %s3811_s12   ;;  %p3208_p0 = scmp.ge.s32.totalorder %s3811_s12, 1  ;;  %s3811_s12 = sphi %s3838_s12, %s14_s12  }
   0x2   : > { %p140_p1 = scmp.lt.s32.totalorder %s3811_s12, 3 }
   0x4   : > { %p141_p2 = pnand %p3208_p0, %p140_p1 }
   0x6   : > { %144 = sbr.rel (%p141_p2) target bundleno = 743 (0x2e7), region = 28 }
   0xd   : > { %vm2109_vm0 = vcmask 1041408   ;;  %v3403_v0 = vld [vmem:[%s5069_s1 + $0x8] sm:$0x3]  ;;  %v3358_v1 = vld [vmem:[%s5069_s1 + $0x2] sm:$0x3]  ;;  %p168_p3 = scmp.lt.s32.totalorder %s3844_s13, 1  ;;  %v252_v2 = vlaneseq }
   0xe   : > { %3755 = vmatprep.subr.msk.bf16.mxu0 %vm2109_vm0, %v3403_v0  ;;  %3751 = vmatprep.subr.msk.bf16.mxu1 %vm2109_vm0, %v3358_v1  ;;  %v2532_v3 = vsel %vm2109_vm0, %v3403_v0, 0  ;;  %v2111_v4 = vsel %vm2109_vm0, %v3358_v1, 0  ;;  %v3813_v5 = vmov 1983009808   ;;  %vm1898_vm1 = vcmask 1040384   ;;  %s3211_s10 = sshll.u32 %s3844_s13, 3 }
   0xf   : > { %3576 = vmatpush3.bf16.msra.mxu0 %v2532_v3  ;;  %3536 = vmatpush3.bf16.msra.mxu1 %v2111_v4  ;;  %s3860_s18 = scalar_select %p168_p3, %s3844_s13, 1  ;;  %v250_v6 = vunpack.c.l.s4 %v3813_v5  ;;  %v253_v7 = vshrl.u32 %v252_v2, 7  ;;  %v5072_v9 = vmov 0.0   ;;  %vm1816_vm2 = vcmask 1041409  }
  0x10   : > { %v3869_v10 = vrot.slane %v5072_v9, 7  ;;  %v4047_v9 = vld [vmem:[%s5069_s1 + $0xa] sm:$0x3]  ;;  %vm1818_vm3 = vcmask 1042434   ;;  %vm1820_vm4 = vcmask 1043459   ;;  %vm1822_vm5 = vcmask 1044484  }
  0x11   : > { %s3444_s19 = sshll.u32 %s3860_s18, 8  ;;  %v251_v8 = vunpack.c.0.s8 %v250_v6  ;;  %v3876_v15 = vsub.s32 0, %v253_v7  ;;  %5167 = vst [vmem:[#allocation21_spill] sm:$0xff] %v4047_v9  ;;  %3756 = vmatprep.subr.msk.bf16.mxu0 %vm2109_vm0, %v4047_v9  ;;  %vm1824_vm6 = vcmask 1045509   ;;  %vm1826_vm7 = vcmask 1046534   ;;  %p174_p4 = scmp.lt.s32.totalorder %s3211_s10, 15 }
  0x12   : > { %s3866_s22 = scalar_lea.vmem %s5068_s0, %s3444_s19  ;;  %5148 = vst [vmem:[#allocation2_spill] sm:$0xff] %v3869_v10  ;;  %v3881_v20 = vsel %vm1898_vm1, 0.0, %v3869_v10  ;;  %vm1828_vm8 = vcmask 1047559   ;;  %vm1967_vm9 = vsmask.f32 3328  ;;  %vm2096_vm12 = vcmask 31744  }
  0x13   : > { %v184_v11 = vld [vmem:[%s3866_s22] sm:$0xff]  ;;  %v185_v12 = vld [vmem:[%s3866_s22 + $0x8] sm:$0xff]  ;;  %v186_v13 = vld [vmem:[%s3866_s22 + $0x10] sm:$0xff]  ;;  %v3874_v14 = vsub.s32 %v251_v8, %v253_v7  ;;  %5150 = vst [vmem:[#allocation4_spill] sm:$0xff] %v3876_v15  ;;  %vm1968_vm10 = vsmask.f32 7440 }
  0x14   : > { %v187_v16 = vld [vmem:[%s3866_s22 + $0x18] sm:$0xff]  ;;  %v248_v17 = vcombine.high %v184_v11, %v184_v11  ;;  %v265_v18 = vcombine.high %v185_v12, %v185_v12  ;;  %v282_v19 = vcombine.high %v186_v13, %v186_v13  ;;  %5151 = vst [vmem:[#allocation5_spill] sm:$0xff] %v3881_v20  ;;  %v208_v25 = vld [vmem:[%s3866_s22 + $0xc0] sm:$0xff]  ;;  %v209_v26 = vld [vmem:[%s3866_s22 + $0xc8] sm:$0xff]  ;;  %vm2262_vm13 = vcmask 1042432   ;;  %s5337_s10 = smov (!%p174_p4, %s3211_s10), 15 }
  0x15   : > { %5149 = vst [vmem:[#allocation3_spill] sm:$0xff] %v3874_v14  ;;  %v3884_v21 = vrot.slane %v184_v11, %v3874_v14  ;;  %v3887_v22 = vrot.slane %v185_v12, %v3874_v14  ;;  %v3890_v23 = vrot.slane %v186_v13, %v3874_v14  ;;  %v299_v24 = vcombine.high %v187_v16, %v187_v16  ;;  %v210_v31 = vld [vmem:[%s3866_s22 + $0xd0] sm:$0xff]  ;;  %v211_v32 = vld [vmem:[%s3866_s22 + $0xd8] sm:$0xff]  ;;  %v212_v45 = vld [vmem:[%s3866_s22 + $0xe0] sm:$0xff]  ;;  %s3212_s11 = sshll.u32 %s5337_s10, 3  ;;  %s3213_s13 = sshll.u32 %s3860_s18, 1 }
  0x16   : > { %v3895_v27 = vrot.slane %v248_v17, %v3874_v14  ;;  %v3898_v28 = vrot.slane %v265_v18, %v3874_v14  ;;  %v3901_v29 = vrot.slane %v282_v19, %v3874_v14  ;;  %v3904_v30 = vrot.slane %v187_v16, %v3874_v14  ;;  %v213_v50 = vld [vmem:[%s3866_s22 + $0xe8] sm:$0xff]  ;;  %v214_v55 = vld [vmem:[%s3866_s22 + $0xf0] sm:$0xff]  ;;  %v215_v60 = vld [vmem:[%s3866_s22 + $0xf8] sm:$0xff]  ;;  %s5041_s16 = scalar_lea.vmem %s5070_s2, %s3212_s11  ;;  %s182_s20 = scalar_lea.vmem %s5071_s3, %s3213_s13 }
  0x17   : > { %v3910_v33 = vcombine.high %v3884_v21, %v3884_v21  ;;  %v3914_v34 = vcombine.high %v3887_v22, %v3887_v22  ;;  %v3918_v35 = vcombine.high %v3890_v23, %v3890_v23  ;;  %v3921_v36 = vrot.slane %v299_v24, %v3874_v14  ;;  %vm4272_vm11 = vmor %vm1967_vm9, %vm1968_vm10 }
  0x18   : > { %v3925_v37 = vcombine.high %v3895_v27, %v3895_v27  ;;  %v3929_v38 = vcombine.high %v3898_v28, %v3898_v28  ;;  %v3933_v39 = vcombine.high %v3901_v29, %v3901_v29  ;;  %v3937_v40 = vcombine.high %v3904_v30, %v3904_v30 }
  0x19   : > { %v3941_v41 = vcombine.high %v3921_v36, %v3921_v36  ;;  %v656_v42 = vcombine.high %v208_v25, %v208_v25  ;;  %v3944_v43 = vrot.slane %v208_v25, %v3874_v14  ;;  %v673_v44 = vcombine.high %v209_v26, %v209_v26 }
  0x1a   : > { %v3948_v46 = vrot.slane %v209_v26, %v3874_v14  ;;  %v690_v47 = vcombine.high %v210_v31, %v210_v31  ;;  %v3951_v48 = vrot.slane %v210_v31, %v3874_v14  ;;  %v707_v49 = vcombine.high %v211_v32, %v211_v32 }
  0x1b   : > { %v3955_v51 = vrot.slane %v656_v42, %v3874_v14  ;;  %v3959_v52 = vcombine.high %v3944_v43, %v3944_v43  ;;  %v3962_v53 = vrot.slane %v673_v44, %v3874_v14  ;;  %v3965_v54 = vrot.slane %v211_v32, %v3874_v14 }
  0x1c   : > { %v3970_v56 = vcombine.high %v3948_v46, %v3948_v46  ;;  %v3973_v57 = vrot.slane %v690_v47, %v3874_v14  ;;  %v3977_v58 = vcombine.high %v3951_v48, %v3951_v48  ;;  %v3980_v59 = vrot.slane %v707_v49, %v3874_v14 }
  0x1d   : > { %5152 = vst [vmem:[#allocation6_spill] sm:$0xff] %v3965_v54  ;;  %v672_v61 = vcombine.high %v3955_v51, %v3955_v51  ;;  %v3987_v62 = vcombine.high %v3962_v53, %v3962_v53  ;;  %v3991_v63 = vcombine.high %v3965_v54, %v3965_v54  ;;  %v724_v0 = vcombine.high %v212_v45, %v212_v45 }
  0x1e   : > { %5153 = vst [vmem:[#allocation7_spill] sm:$0xff] %v3973_v57  ;;  %5154 = vst [vmem:[#allocation8_spill] sm:$0xff] %v3977_v58  ;;  %v3995_v1 = vcombine.high %v3973_v57, %v3973_v57  ;;  %v3999_v2 = vcombine.high %v3980_v59, %v3980_v59  ;;  %v731_v3 = vrot.slane %v212_v45, %v3874_v14  ;;  %v3214_v32 = vrot.slane %v3884_v21, 9 }
  0x1f   : > { %5155 = vst [vmem:[#allocation9_spill] sm:$0xff] %v3980_v59  ;;  %5156 = vst [vmem:[#allocation10_spill] sm:$0xff] %v3991_v63  ;;  %v741_v4 = vcombine.high %v213_v50, %v213_v50  ;;  %v738_v5 = vrot.slane %v724_v0, %v3874_v14  ;;  %v748_v6 = vrot.slane %v213_v50, %v3874_v14  ;;  %v3215_v44 = vrot.slane %v3910_v33, 9 }
  0x20   : > { %5157 = vst [vmem:[#allocation11_spill] sm:$0xff] %v3995_v1  ;;  %5158 = vst [vmem:[#allocation12_spill] sm:$0xff] %v3999_v2  ;;  %v758_v7 = vcombine.high %v214_v55, %v214_v55  ;;  %v4005_v8 = vrot.slane %v214_v55, %v3874_v14  ;;  %v739_v11 = vcombine.high %v731_v3, %v731_v3  ;;  %v3216_v45 = vrot.slane %v3895_v27, 9 }
  0x21   : > { %v755_v12 = vrot.slane %v741_v4, %v3874_v14  ;;  %v775_v13 = vcombine.high %v215_v60, %v215_v60  ;;  %v4009_v16 = vrot.slane %v215_v60, %v3874_v14  ;;  %v740_v17 = vcombine.high %v738_v5, %v738_v5 }
  0x22   : > { %5159 = vst [vmem:[#allocation13_spill] sm:$0xff] %v4005_v8  ;;  %v756_v18 = vcombine.high %v748_v6, %v748_v6  ;;  %v4012_v19 = vrot.slane %v758_v7, %v3874_v14  ;;  %v4016_v24 = vcombine.high %v4005_v8, %v4005_v8  ;;  %v3217_v47 = vrot.slane %v3925_v37, 9 }
  0x23   : > { %5160 = vst [vmem:[#allocation14_spill] sm:$0xff] %v4009_v16  ;;  %v757_v25 = vcombine.high %v755_v12, %v755_v12  ;;  %v4019_v26 = vrot.slane %v775_v13, %v3874_v14  ;;  %v4023_v31 = vcombine.high %v4009_v16, %v4009_v16  ;;  %v3218_v50 = vrot.slane %v3887_v22, 9 }
  0x24   : > { %5161 = vst [vmem:[#allocation15_spill] sm:$0xff] %v4012_v19  ;;  %5162 = vst [vmem:[#allocation16_spill] sm:$0xff] %v4016_v24  ;;  %v4028_v42 = vcombine.high %v4012_v19, %v4012_v19  ;;  %v3219_v55 = vrot.slane %v3914_v34, 9  ;;  %v3220_v60 = vrot.slane %v3898_v28, 9  ;;  %v3221_v0 = vrot.slane %v3929_v38, 9 }
  0x25   : > { %5163 = vst [vmem:[#allocation17_spill] sm:$0xff] %v4019_v26  ;;  %5164 = vst [vmem:[#allocation18_spill] sm:$0xff] %v4023_v31  ;;  %v4035_v49 = vcombine.high %v4019_v26, %v4019_v26  ;;  %v3262_v4 = vrot.slane %v3944_v43, 9  ;;  %v3263_v7 = vrot.slane %v3959_v52, 9  ;;  %v3264_v13 = vrot.slane %v3955_v51, 9 }
  0x26   : > { %5165 = vst [vmem:[#allocation19_spill] sm:$0xff] %v4028_v42  ;;  %v3265_v14 = vrot.slane %v672_v61, 9  ;;  %v3266_v20 = vrot.slane %v3948_v46, 9  ;;  %v3267_v10 = vrot.slane %v3970_v56, 9  ;;  %v3268_v15 = vrot.slane %v3962_v53, 9 }
  0x27   : > { %5166 = vst [vmem:[#allocation20_spill] sm:$0xff] %v4035_v49  ;;  %v3269_v49 = vrot.slane %v3987_v62, 9  ;;  %v3270_v26 = vrot.slane %v731_v3, 9  ;;  %v3271_v31 = vrot.slane %v739_v11, 9  ;;  %v3272_v16 = vrot.slane %v738_v5, 9 }
  0x28   : > { %v3273_v42 = vrot.slane %v740_v17, 9  ;;  %v3274_v19 = vrot.slane %v748_v6, 9  ;;  %v3275_v24 = vrot.slane %v756_v18, 9  ;;  %v3276_v8 = vrot.slane %v755_v12, 9 }
  0x29   : > { %v3277_v2 = vrot.slane %v757_v25, 9  ;;  %v4056_v59 = vmax.f32 %v3884_v21, %v3214_v32  ;;  %v4059_v63 = vmax.f32 %v3910_v33, %v3215_v44  ;;  %v4062_v54 = vmax.f32 %v3895_v27, %v3216_v45  ;;  %v5192_v45 = vld [vmem:[#allocation12_spill] sm:$0xff] }
  0x2a   : > { %v4065_v9 = vmax.f32 %v3925_v37, %v3217_v47  ;;  %v4068_v1 = vmax.f32 %v3887_v22, %v3218_v50  ;;  %v4071_v57 = vmax.f32 %v3914_v34, %v3219_v55  ;;  %v4074_v58 = vmax.f32 %v3898_v28, %v3220_v60 }
  0x2b   : > { %v4077_v21 = vmax.f32 %v3929_v38, %v3221_v0  ;;  %v4080_v33 = vmax.f32 %v3944_v43, %v3262_v4  ;;  %v4083_v27 = vmax.f32 %v3959_v52, %v3263_v7  ;;  %v4086_v37 = vmax.f32 %v3955_v51, %v3264_v13  ;;  %v5194_v55 = vld [vmem:[#allocation16_spill] sm:$0xff]  ;;  %v5195_v0 = vld [vmem:[#allocation15_spill] sm:$0xff] }
  0x2c   : > { %5168 = vst [vmem:[#allocation22_spill] sm:$0xff] %v4074_v58  ;;  %v4088_v22 = vmax.f32 %v672_v61, %v3265_v14  ;;  %v4091_v34 = vmax.f32 %v3948_v46, %v3266_v20  ;;  %v4094_v28 = vmax.f32 %v3970_v56, %v3267_v10  ;;  %v4097_v38 = vmax.f32 %v3962_v53, %v3268_v15 }
  0x2d   : > { %5169 = vst [vmem:[#allocation23_spill] sm:$0xff] %v4077_v21  ;;  %5170 = vst [vmem:[#allocation24_spill] sm:$0xff] %v4080_v33  ;;  %v4100_v43 = vmax.f32 %v3987_v62, %v3269_v49  ;;  %v4102_v32 = vmax.f32 %v731_v3, %v3270_v26  ;;  %v4104_v52 = vmax.f32 %v739_v11, %v3271_v31  ;;  %v3278_v15 = vrot.slane %v3890_v23, 9  ;;  %v5190_v26 = vld [vmem:[#allocation10_spill] sm:$0xff]  ;;  %v5193_v49 = vld [vmem:[#allocation13_spill] sm:$0xff] }
  0x2e   : > { %5171 = vst [vmem:[#allocation25_spill] sm:$0xff] %v4083_v27  ;;  %5172 = vst [vmem:[#allocation26_spill] sm:$0xff] %v4086_v37  ;;  %v4106_v51 = vmax.f32 %v738_v5, %v3272_v16  ;;  %v4108_v14 = vmax.f32 %v740_v17, %v3273_v42  ;;  %v4110_v61 = vmax.f32 %v748_v6, %v3274_v19  ;;  %v3279_v53 = vrot.slane %v3918_v35, 9  ;;  %v5187_v16 = vld [vmem:[#allocation7_spill] sm:$0xff]  ;;  %v5191_v42 = vld [vmem:[#allocation9_spill] sm:$0xff] }
  0x2f   : > { %5173 = vst [vmem:[#allocation27_spill] sm:$0xff] %v4088_v22  ;;  %5174 = vst [vmem:[#allocation28_spill] sm:$0xff] %v4091_v34  ;;  %v4112_v20 = vmax.f32 %v756_v18, %v3275_v24  ;;  %v4114_v10 = vmax.f32 %v755_v12, %v3276_v8  ;;  %v4116_v46 = vmax.f32 %v757_v25, %v3277_v2  ;;  %v3280_v56 = vrot.slane %v3901_v29, 9  ;;  %v5186_v2 = vld [vmem:[#allocation8_spill] sm:$0xff]  ;;  %v5188_v18 = vld [vmem:[#allocation11_spill] sm:$0xff] }
  0x30   : > { %5175 = vst [vmem:[#allocation29_spill] sm:$0xff] %v4094_v28  ;;  %5176 = vst [vmem:[#allocation30_spill] sm:$0xff] %v4097_v38  ;;  %v3281_v62 = vrot.slane %v3933_v39, 9  ;;  %v3282_v3 = vrot.slane %v3904_v30, 9  ;;  %v3283_v5 = vrot.slane %v3937_v40, 9  ;;  %v3284_v6 = vrot.slane %v3921_v36, 9 }
  0x31   : > { %5177 = vst [vmem:[#allocation31_spill] sm:$0xff] %v4100_v43  ;;  %5178 = vst [vmem:[#allocation32_spill] sm:$0xff] %v4102_v32  ;;  %v3285_v11 = vrot.slane %v3941_v41, 9  ;;  %v3326_v8 = vrot.slane %v3951_v48, 9  ;;  %v3327_v12 = vrot.slane %v5186_v2, 9  ;;  %v3328_v17 = vrot.slane %v5187_v16, 9 }
  0x32   : > { %5179 = vst [vmem:[#allocation33_spill] sm:$0xff] %v4104_v52  ;;  %5180 = vst [vmem:[#allocation34_spill] sm:$0xff] %v4106_v51  ;;  %v3329_v19 = vrot.slane %v5188_v18, 9  ;;  %v5189_v24 = vld [vmem:[#allocation6_spill] sm:$0xff]  ;;  %v3331_v31 = vrot.slane %v5190_v26, 9  ;;  %v3332_v44 = vrot.slane %v5191_v42, 9  ;;  %v1368_v43 = vmax.f32 %v3890_v23, %v3278_v15 }
  0x33   : > { %5181 = vst [vmem:[#allocation35_spill] sm:$0xff] %v4108_v14  ;;  %5182 = vst [vmem:[#allocation36_spill] sm:$0xff] %v4110_v61  ;;  %v3330_v25 = vrot.slane %v5189_v24, 9  ;;  %v3333_v47 = vrot.slane %v5192_v45, 9  ;;  %v3334_v50 = vrot.slane %v5193_v49, 9  ;;  %v3335_v60 = vrot.slane %v5194_v55, 9 }
  0x34   : > { %5183 = vst [vmem:[#allocation37_spill] sm:$0xff] %v4112_v20  ;;  %5184 = vst [vmem:[#allocation38_spill] sm:$0xff] %v4114_v10  ;;  %v3336_v4 = vrot.slane %v5195_v0, 9  ;;  %v5196_v7 = vld [vmem:[#allocation19_spill] sm:$0xff]  ;;  %v5198_v20 = vld [vmem:[#allocation18_spill] sm:$0xff]  ;;  %v1369_v38 = vmax.f32 %v3918_v35, %v3279_v53  ;;  %v1370_v28 = vmax.f32 %v3901_v29, %v3280_v56  ;;  %v1371_v34 = vmax.f32 %v3933_v39, %v3281_v62 }
  0x35   : > { %5185 = vst [vmem:[#allocation39_spill] sm:$0xff] %v4116_v46  ;;  %v3337_v13 = vrot.slane %v5196_v7, 9  ;;  %v5197_v46 = vld [vmem:[#allocation14_spill] sm:$0xff]  ;;  %v3339_v61 = vrot.slane %v5198_v20, 9  ;;  %v5199_v14 = vld [vmem:[#allocation17_spill] sm:$0xff]  ;;  %v5200_v52 = vld [vmem:[#allocation20_spill] sm:$0xff]  ;;  %v1372_v22 = vmax.f32 %v3904_v30, %v3282_v3  ;;  %v1373_v37 = vmax.f32 %v3937_v40, %v3283_v5 }
  0x36   : > { %v3338_v10 = vrot.slane %v5197_v46, 9  ;;  %v3340_v51 = vrot.slane %v5199_v14, 9  ;;  %v3341_v32 = vrot.slane %v5200_v52, 9  ;;  %v1374_v27 = vmax.f32 %v3921_v36, %v3284_v6 }
  0x37   : > { %v1375_v33 = vmax.f32 %v3941_v41, %v3285_v11  ;;  %v1416_v21 = vmax.f32 %v3951_v48, %v3326_v8  ;;  %v1417_v58 = vmax.f32 %v5186_v2, %v3327_v12  ;;  %v1418_v23 = vmax.f32 %v5187_v16, %v3328_v17  ;;  %v5201_v16 = vld [vmem:[#allocation22_spill] sm:$0xff] }
  0x38   : > { %v1419_v35 = vmax.f32 %v5188_v18, %v3329_v19  ;;  %v1420_v29 = vmax.f32 %v5189_v24, %v3330_v25  ;;  %v1421_v39 = vmax.f32 %v5190_v26, %v3331_v31  ;;  %v1422_v30 = vmax.f32 %v5191_v42, %v3332_v44 }
  0x39   : > { %v1423_v40 = vmax.f32 %v5192_v45, %v3333_v47  ;;  %v1424_v36 = vmax.f32 %v5193_v49, %v3334_v50  ;;  %v1425_v41 = vmax.f32 %v5194_v55, %v3335_v60  ;;  %v1426_v48 = vmax.f32 %v5195_v0, %v3336_v4  ;;  %v5213_v17 = vld [vmem:[#allocation34_spill] sm:$0xff]  ;;  %v5219_v49 = vld [vmem:[#allocation4_spill] sm:$0xff] }
  0x3a   : > { %v1427_v15 = vmax.f32 %v5196_v7, %v3337_v13  ;;  %v1428_v53 = vmax.f32 %v5197_v46, %v3338_v10  ;;  %v1429_v56 = vmax.f32 %v5198_v20, %v3339_v61  ;;  %v1430_v62 = vmax.f32 %v5199_v14, %v3340_v51  ;;  %v5202_v61 = vld [vmem:[#allocation23_spill] sm:$0xff]  ;;  %v5203_v51 = vld [vmem:[#allocation24_spill] sm:$0xff]  ;;  %v5212_v46 = vld [vmem:[#allocation33_spill] sm:$0xff] }
  0x3b   : > { %v1431_v3 = vmax.f32 %v5200_v52, %v3341_v32  ;;  %v1432_v5 = vmax.f32 %v4056_v59, %v1368_v43  ;;  %v1433_v6 = vmax.f32 %v4059_v63, %v1369_v38  ;;  %v1434_v11 = vmax.f32 %v4062_v54, %v1370_v28  ;;  %v5204_v32 = vld [vmem:[#allocation25_spill] sm:$0xff]  ;;  %v5205_v59 = vld [vmem:[#allocation26_spill] sm:$0xff]  ;;  %v5206_v63 = vld [vmem:[#allocation27_spill] sm:$0xff] }
  0x3c   : > { %v1435_v8 = vmax.f32 %v4065_v9, %v1371_v34  ;;  %v1436_v2 = vmax.f32 %v4068_v1, %v1372_v22  ;;  %v1437_v12 = vmax.f32 %v4071_v57, %v1373_v37  ;;  %v1438_v10 = vmax.f32 %v5201_v16, %v1374_v27  ;;  %v5207_v28 = vld [vmem:[#allocation28_spill] sm:$0xff]  ;;  %v5208_v34 = vld [vmem:[#allocation29_spill] sm:$0xff]  ;;  %v5209_v22 = vld [vmem:[#allocation30_spill] sm:$0xff] }
  0x3d   : > { %v1439_v20 = vmax.f32 %v5202_v61, %v1375_v33  ;;  %v1480_v14 = vmax.f32 %v5203_v51, %v1416_v21  ;;  %v1481_v52 = vmax.f32 %v5204_v32, %v1417_v58  ;;  %v1482_v43 = vmax.f32 %v5205_v59, %v1418_v23  ;;  %v5210_v27 = vld [vmem:[#allocation31_spill] sm:$0xff]  ;;  %v5211_v38 = vld [vmem:[#allocation32_spill] sm:$0xff]  ;;  %v5216_v26 = vld [vmem:[#allocation37_spill] sm:$0xff] }
  0x3e   : > { %v1483_v54 = vmax.f32 %v5206_v63, %v1419_v35  ;;  %v1484_v9 = vmax.f32 %v5207_v28, %v1420_v29  ;;  %v1485_v1 = vmax.f32 %v5208_v34, %v1421_v39  ;;  %v1486_v57 = vmax.f32 %v5209_v22, %v1422_v30  ;;  %v5214_v18 = vld [vmem:[#allocation35_spill] sm:$0xff]  ;;  %v5215_v24 = vld [vmem:[#allocation36_spill] sm:$0xff]  ;;  %v5217_v42 = vld [vmem:[#allocation38_spill] sm:$0xff] }
  0x3f   : > { %v1487_v37 = vmax.f32 %v5210_v27, %v1423_v40  ;;  %v1488_v33 = vmax.f32 %v5211_v38, %v1424_v36  ;;  %v1489_v21 = vmax.f32 %v5212_v46, %v1425_v41  ;;  %v1490_v58 = vmax.f32 %v5213_v17, %v1426_v48  ;;  %v5218_v45 = vld [vmem:[#allocation39_spill] sm:$0xff]  ;;  %v5221_v59 = vld [vmem:[#allocation5_spill] sm:$0xff] }
  0x40   : > { %v1491_v19 = vmax.f32 %v5214_v18, %v1427_v15  ;;  %v1492_v25 = vmax.f32 %v5215_v24, %v1428_v53  ;;  %v1493_v31 = vmax.f32 %v5216_v26, %v1429_v56  ;;  %v1494_v44 = vmax.f32 %v5217_v42, %v1430_v62  ;;  %v188_v26 = vld [vmem:[%s3866_s22 + $0x20] sm:$0xff] }
  0x41   : > { %v1495_v47 = vmax.f32 %v5218_v45, %v1431_v3  ;;  %v1563_v50 = vrot.slane %v1432_v5, %v5219_v49  ;;  %v1567_v55 = vrot.slane %v1433_v6, %v5219_v49  ;;  %v1571_v60 = vrot.slane %v1434_v11, %v5219_v49 }
  0x42   : > { %v1575_v0 = vrot.slane %v1435_v8, %v5219_v49  ;;  %v1579_v4 = vrot.slane %v1436_v2, %v5219_v49  ;;  %v1583_v7 = vrot.slane %v1437_v12, %v5219_v49  ;;  %v1587_v13 = vrot.slane %v1438_v10, %v5219_v49 }
  0x43   : > { %v1591_v23 = vrot.slane %v1439_v20, %v5219_v49  ;;  %v1755_v35 = vrot.slane %v1480_v14, %v5219_v49  ;;  %v1759_v29 = vrot.slane %v1481_v52, %v5219_v49  ;;  %v1763_v39 = vrot.slane %v1482_v43, %v5219_v49  ;;  %v5220_v20 = vld [vmem:[#allocation2_spill] sm:$0xff] }
  0x44   : > { %v1767_v30 = vrot.slane %v1483_v54, %v5219_v49  ;;  %v1771_v40 = vrot.slane %v1484_v9, %v5219_v49  ;;  %v1775_v36 = vrot.slane %v1485_v1, %v5219_v49  ;;  %v1779_v41 = vrot.slane %v1486_v57, %v5219_v49 }
  0x45   : > { %v1783_v48 = vrot.slane %v1487_v37, %v5219_v49  ;;  %v1787_v15 = vrot.slane %v1488_v33, %v5219_v49  ;;  %v1791_v53 = vrot.slane %v1489_v21, %v5219_v49  ;;  %v1795_v56 = vrot.slane %v1490_v58, %v5219_v49 }
  0x46   : > { %v1799_v62 = vrot.slane %v1491_v19, %v5219_v49  ;;  %v1803_v3 = vrot.slane %v1492_v25, %v5219_v49  ;;  %v1807_v5 = vrot.slane %v1493_v31, %v5219_v49  ;;  %v1811_v6 = vrot.slane %v1494_v44, %v5219_v49 }
  0x47   : > { %v1815_v11 = vrot.slane %v1495_v47, %v5219_v49  ;;  %v1817_v8 = vsel %vm1816_vm2, %v1567_v55, %v1563_v50  ;;  %v1865_v2 = vsel %vm1816_vm2, %v1759_v29, %v1755_v35  ;;  %v1872_v12 = vsel %vm1816_vm2, %v1791_v53, %v1787_v15  ;;  %v189_v15 = vld [vmem:[%s3866_s22 + $0x28] sm:$0xff] }
  0x48   : > { %v1819_v16 = vsel %vm1818_vm3, %v1571_v60, %v1817_v8  ;;  %v1866_v10 = vsel %vm1818_vm3, %v1763_v39, %v1865_v2  ;;  %v1873_v61 = vsel %vm1818_vm3, %v1795_v56, %v1872_v12  ;;  %v1908_v51 = vsel %vm1898_vm1, %v5220_v20, 0.0 }
  0x49   : > { %v1821_v14 = vsel %vm1820_vm4, %v1575_v0, %v1819_v16  ;;  %v1867_v32 = vsel %vm1820_vm4, %v1767_v30, %v1866_v10  ;;  %v1874_v52 = vsel %vm1820_vm4, %v1799_v62, %v1873_v61  ;;  %v4227_v43 = vpack.c.bf16 %v5221_v59, %v5221_v59  ;;  %v5235_v62 = vld [vmem:[#allocation3_spill] sm:$0xff]  ;;  %v190_v16 = vld [vmem:[%s3866_s22 + $0x30] sm:$0xff] }
  0x4a   : > { %v1823_v63 = vsel %vm1822_vm5, %v1579_v4, %v1821_v14  ;;  %v1868_v54 = vsel %vm1822_vm5, %v1771_v40, %v1867_v32  ;;  %v1875_v28 = vsel %vm1822_vm5, %v1803_v3, %v1874_v52  ;;  %v4232_v9 = vpack.c.bf16 %v1908_v51, %v1908_v51 }
  0x4b   : > { %5222 = vst [vmem:[#allocation8_spill] sm:$0xff] %v4227_v43  ;;  %v1825_v34 = vsel %vm1824_vm6, %v1583_v7, %v1823_v63  ;;  %v1869_v1 = vsel %vm1824_vm6, %v1775_v36, %v1868_v54  ;;  %v1876_v22 = vsel %vm1824_vm6, %v1807_v5, %v1875_v28  ;;  %v1971_v57 = vshrl.u32 %v4227_v43, 16  ;;  %v191_v54 = vld [vmem:[%s3866_s22 + $0x38] sm:$0xff] }
  0x4c   : > { %5223 = vst [vmem:[#allocation7_spill] sm:$0xff] %v4232_v9  ;;  %v1827_v27 = vsel %vm1826_vm7, %v1587_v13, %v1825_v34  ;;  %v1870_v37 = vsel %vm1826_vm7, %v1779_v41, %v1869_v1  ;;  %v1877_v38 = vsel %vm1826_vm7, %v1811_v6, %v1876_v22  ;;  %v1974_v33 = vshll.u32 %v4227_v43, 16 }
  0x4d   : > { %v1829_v46 = vsel %vm1828_vm8, %v1591_v23, %v1827_v27  ;;  %v1871_v21 = vsel %vm1828_vm8, %v1783_v48, %v1870_v37  ;;  %v1878_v17 = vsel %vm1828_vm8, %v1815_v11, %v1877_v38  ;;  %v1973_v58 = vrot.slane %v1971_v57, 4  ;;  %v192_v27 = vld [vmem:[%s3866_s22 + $0x40] sm:$0xff]  ;;  %v193_v37 = vld [vmem:[%s3866_s22 + $0x48] sm:$0xff] }
  0x4e   : > { %v1881_v18 = vrot.slane %v1829_v46, 7  ;;  %v1887_v19 = vrot.slane %v1871_v21, 7  ;;  %v1888_v24 = vrot.slane %v1878_v17, 7  ;;  %v1976_v25 = vrot.slane %v1974_v33, 5 }
  0x4f   : > { %v1980_v44 = vshll.u32 %v4232_v9, 16  ;;  %v316_v0 = vcombine.high %v188_v26, %v188_v26  ;;  %v5230_v40 = vmov 0  ;;  %v4284_v3 = vrot.slane %v188_v26, %v5235_v62 }
  0x50   : > { %v4247_v31 = vsel %vm1898_vm1, 0.0, %v1881_v18  ;;  %v1909_v42 = vsel %vm1898_vm1, %v1881_v18, 0.0  ;;  %v4252_v45 = vsel %vm1898_vm1, 0.0, %v1887_v19  ;;  %v4261_v55 = vsel %vm1898_vm1, 0.0, %v1888_v24 }
  0x51   : > { %5224 = vst [vmem:[#allocation11_spill] sm:$0xff] %v4247_v31  ;;  %5225 = vst [vmem:[#allocation6_spill] sm:$0xff] %v4252_v45  ;;  %v4256_v47 = vpack.c.bf16 %v4247_v31, %v4247_v31  ;;  %v4258_v50 = vpack.c.bf16 %v1909_v42, %v1909_v42  ;;  %v1977_v60 = vor.u32 %v1976_v25, %v1973_v58  ;;  %v1915_v4 = vsel %vm1898_vm1, %v1887_v19, 0.0 }
  0x52   : > { %5228 = vst [vmem:[#allocation12_spill] sm:$0xff] %v4261_v55  ;;  %v1916_v35 = vsel %vm1898_vm1, %v1888_v24, 0.0  ;;  %v4270_v29 = vpack.c.bf16 %v4252_v45, %v4252_v45  ;;  %v1982_v30 = vrot.slane %v1980_v44, 5  ;;  %v5231_v40 = vsel %vm4272_vm11, 4294967295, %v5230_v40 }
  0x53   : > { %5226 = vst [vmem:[#allocation10_spill] sm:$0xff] %v4256_v47  ;;  %5227 = vst [vmem:[#allocation9_spill] sm:$0xff] %v4258_v50  ;;  %v1985_v7 = vshrl.u32 %v4256_v47, 16  ;;  %v1988_v13 = vshll.u32 %v4256_v47, 16  ;;  %v1994_v23 = vshll.u32 %v4258_v50, 16  ;;  %v1978_v39 = vrot.slane %v1977_v60, 4 }
  0x54   : > { %5229 = vst [vmem:[#allocation13_spill] sm:$0xff] %v4270_v29  ;;  %5232 = vst [vmem:[#allocation16_spill] sm:$0xff] %v5231_v40  ;;  %v4278_v48 = vpack.c.bf16 %v4261_v55, %v4261_v55  ;;  %v4281_v53 = vpack.c.bf16 %v1915_v4, %v1915_v4  ;;  %v4286_v6 = vpack.c.bf16 %v1916_v35, %v1916_v35  ;;  %v2069_v12 = vshrl.u32 %v4270_v29, 16  ;;  %v195_v4 = vld [vmem:[%s3866_s22 + $0x58] sm:$0xff]  ;;  %v4360_v35 = vld [vmem:[%s5069_s1] sm:$0x3] }
  0x55   : > { %v1987_v36 = vrot.slane %v1985_v7, 4  ;;  %v1990_v41 = vrot.slane %v1988_v13, 5  ;;  %v1996_v56 = vrot.slane %v1994_v23, 5  ;;  %v4292_v2 = vsel %vm4272_vm11, %v1978_v39, %v1982_v30  ;;  %5241 = vst [vmem:[#allocation23_spill] sm:$0xff] %v4360_v35  ;;  %v196_v30 = vld [vmem:[%s3866_s22 + $0x60] sm:$0xff]  ;;  %3752 = vmatprep.subr.msk.bf16.mxu1 %vm2109_vm0, %v4360_v35 }
  0x56   : > { %5233 = vst [vmem:[#allocation15_spill] sm:$0xff] %v4278_v48  ;;  %5234 = vst [vmem:[#allocation19_spill] sm:$0xff] %v4281_v53  ;;  %v2499_v11 = vshrl.u32 %v4278_v48, 16  ;;  %v2502_v8 = vshll.u32 %v4278_v48, 16  ;;  %v4297_v10 = vrot.slane %v316_v0, %v5235_v62  ;;  %v333_v61 = vcombine.high %v189_v15, %v189_v15  ;;  %v194_v0 = vld [vmem:[%s3866_s22 + $0x50] sm:$0xff] }
  0x57   : > { %v1991_v5 = vor.u32 %v1990_v41, %v1987_v36  ;;  %5236 = vst [vmem:[#allocation14_spill] sm:$0xff] %v4286_v6  ;;  %5237 = vst [vmem:[#allocation18_spill] sm:$0xff] %v4292_v2  ;;  %v2508_v32 = vshll.u32 %v4286_v6, 16  ;;  %v4304_v28 = vrot.slane %v189_v15, %v5235_v62  ;;  %v350_v38 = vcombine.high %v190_v16, %v190_v16 }
  0x58   : > { %v2501_v51 = vrot.slane %v2499_v11, 4  ;;  %v2504_v14 = vrot.slane %v2502_v8, 5  ;;  %v4307_v34 = vrot.slane %v333_v61, %v5235_v62  ;;  %v4315_v33 = vrot.slane %v2069_v12, 4  ;;  %v197_v12 = vld [vmem:[%s3866_s22 + $0x68] sm:$0xff] }
  0x59   : > { %v1992_v20 = vrot.slane %v1991_v5, 4  ;;  %v2510_v57 = vrot.slane %v2508_v32, 5  ;;  %v4321_v21 = vcombine.high %v4284_v3, %v4284_v3  ;;  %v4325_v17 = vcombine.high %v4297_v10, %v4297_v10 }
  0x5a   : > { %v2505_v22 = vor.u32 %v2504_v14, %v2501_v51  ;;  %5239 = vst [vmem:[#allocation20_spill] sm:$0xff] %v4315_v33  ;;  %v4328_v18 = vrot.slane %v190_v16, %v5235_v62  ;;  %v4331_v19 = vrot.slane %v350_v38, %v5235_v62  ;;  %v367_v24 = vcombine.high %v191_v54, %v191_v54  ;;  %v198_v14 = vld [vmem:[%s3866_s22 + $0x70] sm:$0xff] }
  0x5b   : > { %v4311_v1 = vsel %vm4272_vm11, %v1992_v20, %v1996_v56  ;;  %v4335_v25 = vrot.slane %v191_v54, %v5235_v62  ;;  %v384_v26 = vcombine.high %v192_v27, %v192_v27  ;;  %v4338_v42 = vrot.slane %v192_v27, %v5235_v62 }
  0x5c   : > { %5238 = vst [vmem:[#allocation17_spill] sm:$0xff] %v4311_v1  ;;  %v3359_v46 = vcombine.low %v4292_v2, %v4311_v1  ;;  %v2506_v58 = vrot.slane %v2505_v22, 4  ;;  %v401_v44 = vcombine.high %v193_v37, %v193_v37  ;;  %v4348_v7 = vcombine.high %v4304_v28, %v4304_v28 }
  0x5d   : > { %v4352_v13 = vcombine.high %v4307_v34, %v4307_v34  ;;  %v4355_v23 = vrot.slane %v367_v24, %v5235_v62  ;;  %v4367_v36 = vcombine.high %v4328_v18, %v4328_v18  ;;  %v4371_v41 = vcombine.high %v4331_v19, %v4331_v19 }
  0x5e   : > { %3537 = vmatprep.mubr.msk.bf16.mxu1 %vm2096_vm12, %v3359_v46  ;;  %v4342_v60 = vsel %vm4272_vm11, %v2506_v58, %v2510_v57  ;;  %v4374_v15 = vrot.slane %v384_v26, %v5235_v62  ;;  %v4380_v56 = vcombine.high %v4335_v25, %v4335_v25  ;;  %v4387_v11 = vrot.slane %v193_v37, %v5235_v62  ;;  %v199_v58 = vld [vmem:[%s3866_s22 + $0x78] sm:$0xff] }
  0x5f   : > { %5240 = vst [vmem:[#allocation22_spill] sm:$0xff] %v4342_v60  ;;  %v4384_v5 = vcombine.high %v4355_v23, %v4355_v23  ;;  %v4390_v8 = vrot.slane %v401_v44, %v5235_v62  ;;  %v4395_v16 = vcombine.high %v4338_v42, %v4338_v42  ;;  %v418_v61 = vcombine.high %v194_v0, %v194_v0 }
  0x60   : > { %v4398_v20 = vrot.slane %v194_v0, %v5235_v62  ;;  %v435_v51 = vcombine.high %v195_v4, %v195_v4  ;;  %v4403_v32 = vcombine.high %v4374_v15, %v4374_v15  ;;  %v4407_v54 = vcombine.high %v4387_v11, %v4387_v11 }
  0x61   : > { %v4410_v22 = vrot.slane %v195_v4, %v5235_v62  ;;  %v452_v57 = vcombine.high %v196_v30, %v196_v30  ;;  %v4414_v27 = vcombine.high %v4390_v8, %v4390_v8  ;;  %v4417_v37 = vrot.slane %v418_v61, %v5235_v62 }
  0x62   : > { %v4420_v38 = vrot.slane %v435_v51, %v5235_v62  ;;  %v4423_v46 = vrot.slane %v196_v30, %v5235_v62  ;;  %v4428_v24 = vcombine.high %v4398_v20, %v4398_v20  ;;  %v469_v44 = vcombine.high %v197_v12, %v197_v12 }
  0x63   : > { %5242 = vst [vmem:[#allocation24_spill] sm:$0xff] %v4410_v22  ;;  %5243 = vst [vmem:[#allocation25_spill] sm:$0xff] %v4417_v37  ;;  %v4431_v26 = vrot.slane %v452_v57, %v5235_v62  ;;  %v4434_v0 = vrot.slane %v197_v12, %v5235_v62  ;;  %v4438_v4 = vcombine.high %v4417_v37, %v4417_v37  ;;  %v3224_v6 = vrot.slane %v4297_v10, 9 }
  0x64   : > { %5244 = vst [vmem:[#allocation26_spill] sm:$0xff] %v4420_v38  ;;  %5245 = vst [vmem:[#allocation27_spill] sm:$0xff] %v4428_v24  ;;  %v4442_v30 = vcombine.high %v4410_v22, %v4410_v22  ;;  %v4446_v61 = vcombine.high %v4420_v38, %v4420_v38  ;;  %v486_v51 = vcombine.high %v198_v14, %v198_v14  ;;  %v3225_v48 = vrot.slane %v4325_v17, 9 }
  0x65   : > { %5246 = vst [vmem:[#allocation28_spill] sm:$0xff] %v4438_v4  ;;  %v467_v57 = vcombine.high %v4423_v46, %v4423_v46  ;;  %v468_v12 = vcombine.high %v4431_v26, %v4431_v26  ;;  %v483_v39 = vrot.slane %v469_v44, %v5235_v62  ;;  %v4454_v63 = vrot.slane %v198_v14, %v5235_v62 }
  0x66   : > { %5247 = vst [vmem:[#allocation29_spill] sm:$0xff] %v4442_v30  ;;  %5248 = vst [vmem:[#allocation30_spill] sm:$0xff] %v4446_v61  ;;  %v484_v52 = vcombine.high %v4434_v0, %v4434_v0  ;;  %v4459_v2 = vrot.slane %v486_v51, %v5235_v62  ;;  %v503_v55 = vcombine.high %v199_v58, %v199_v58  ;;  %v3222_v44 = vrot.slane %v4284_v3, 9 }
  0x67   : > { %5249 = vst [vmem:[#allocation31_spill] sm:$0xff] %v4454_v63  ;;  %v4462_v45 = vrot.slane %v199_v58, %v5235_v62  ;;  %v485_v31 = vcombine.high %v483_v39, %v483_v39  ;;  %v4466_v59 = vcombine.high %v4454_v63, %v4454_v63  ;;  %v3223_v14 = vrot.slane %v4321_v21, 9 }
  0x68   : > { %5250 = vst [vmem:[#allocation32_spill] sm:$0xff] %v4459_v2  ;;  %v4472_v60 = vcombine.high %v4459_v2, %v4459_v2  ;;  %v4475_v51 = vrot.slane %v503_v55, %v5235_v62  ;;  %v3226_v53 = vrot.slane %v4304_v28, 9  ;;  %v3227_v33 = vrot.slane %v4348_v7, 9 }
  0x69   : > { %5251 = vst [vmem:[#allocation33_spill] sm:$0xff] %v4462_v45  ;;  %5252 = vst [vmem:[#allocation34_spill] sm:$0xff] %v4466_v59  ;;  %v4479_v58 = vcombine.high %v4462_v45, %v4462_v45  ;;  %v3228_v43 = vrot.slane %v4307_v34, 9  ;;  %v3229_v55 = vrot.slane %v4352_v13, 9  ;;  %v3230_v50 = vrot.slane %v4338_v42, 9 }
  0x6a   : > { %5253 = vst [vmem:[#allocation35_spill] sm:$0xff] %v4472_v60  ;;  %5254 = vst [vmem:[#allocation36_spill] sm:$0xff] %v4475_v51  ;;  %v4488_v9 = vcombine.high %v4475_v51, %v4475_v51  ;;  %v3231_v29 = vrot.slane %v4395_v16, 9  ;;  %v3232_v47 = vrot.slane %v4374_v15, 9  ;;  %v3233_v35 = vrot.slane %v4403_v32, 9 }
  0x6b   : > { %5255 = vst [vmem:[#allocation37_spill] sm:$0xff] %v4479_v58  ;;  %v3234_v1 = vrot.slane %v4387_v11, 9  ;;  %v3235_v40 = vrot.slane %v4407_v54, 9  ;;  %v3236_v62 = vrot.slane %v4390_v8, 9  ;;  %v3237_v49 = vrot.slane %v4414_v27, 9 }
  0x6c   : > { %5256 = vst [vmem:[#allocation38_spill] sm:$0xff] %v4488_v9  ;;  %v3238_v9 = vrot.slane %v4423_v46, 9  ;;  %v3239_v51 = vrot.slane %v467_v57, 9  ;;  %v3240_v58 = vrot.slane %v4431_v26, 9  ;;  %v3241_v45 = vrot.slane %v468_v12, 9 }
  0x6d   : > { %v3242_v60 = vrot.slane %v4434_v0, 9  ;;  %v3243_v2 = vrot.slane %v484_v52, 9  ;;  %v3244_v59 = vrot.slane %v483_v39, 9  ;;  %v3245_v63 = vrot.slane %v485_v31, 9 }
  0x6e   : > { %v4503_v61 = vmax.f32 %v4284_v3, %v3222_v44  ;;  %v4506_v38 = vmax.f32 %v4321_v21, %v3223_v14  ;;  %v4509_v30 = vmax.f32 %v4297_v10, %v3224_v6  ;;  %v4512_v22 = vmax.f32 %v4325_v17, %v3225_v48 }
  0x6f   : > { %v4515_v4 = vmax.f32 %v4304_v28, %v3226_v53  ;;  %v4518_v37 = vmax.f32 %v4348_v7, %v3227_v33  ;;  %v4521_v24 = vmax.f32 %v4307_v34, %v3228_v43  ;;  %v4524_v3 = vmax.f32 %v4352_v13, %v3229_v55  ;;  %v5284_v14 = vld [vmem:[#allocation32_spill] sm:$0xff] }
  0x70   : > { %v4527_v21 = vmax.f32 %v4338_v42, %v3230_v50  ;;  %v4530_v6 = vmax.f32 %v4395_v16, %v3231_v29  ;;  %v4533_v48 = vmax.f32 %v4374_v15, %v3232_v47  ;;  %v4536_v53 = vmax.f32 %v4403_v32, %v3233_v35  ;;  %v5279_v16 = vld [vmem:[#allocation29_spill] sm:$0xff] }
  0x71   : > { %5257 = vst [vmem:[#allocation39_spill] sm:$0xff] %v4521_v24  ;;  %5258 = vst [vmem:[#allocation2_spill] sm:$0xff] %v4524_v3  ;;  %v4539_v10 = vmax.f32 %v4387_v11, %v3234_v1  ;;  %v4542_v43 = vmax.f32 %v4407_v54, %v3235_v40  ;;  %v4545_v28 = vmax.f32 %v4390_v8, %v3236_v62  ;;  %v3288_v42 = vrot.slane %v4331_v19, 9  ;;  %v5278_v11 = vld [vmem:[#allocation24_spill] sm:$0xff]  ;;  %v5280_v54 = vld [vmem:[#allocation26_spill] sm:$0xff] }
  0x72   : > { %5259 = vst [vmem:[#allocation40_spill] sm:$0xff] %v4527_v21  ;;  %5260 = vst [vmem:[#allocation41_spill] sm:$0xff] %v4530_v6  ;;  %v4548_v50 = vmax.f32 %v4414_v27, %v3237_v49  ;;  %v4551_v29 = vmax.f32 %v4423_v46, %v3238_v9  ;;  %v4553_v47 = vmax.f32 %v467_v57, %v3239_v51  ;;  %v3286_v49 = vrot.slane %v4328_v18, 9  ;;  %v5281_v46 = vld [vmem:[#allocation30_spill] sm:$0xff] }
  0x73   : > { %5261 = vst [vmem:[#allocation42_spill] sm:$0xff] %v4533_v48  ;;  %5262 = vst [vmem:[#allocation43_spill] sm:$0xff] %v4536_v53  ;;  %v4556_v34 = vmax.f32 %v4431_v26, %v3240_v58  ;;  %v4558_v33 = vmax.f32 %v468_v12, %v3241_v45  ;;  %v4561_v1 = vmax.f32 %v4434_v0, %v3242_v60  ;;  %v3287_v9 = vrot.slane %v4367_v36, 9  ;;  %v5282_v0 = vld [vmem:[#allocation31_spill] sm:$0xff]  ;;  %v5283_v12 = vld [vmem:[#allocation34_spill] sm:$0xff] }
  0x74   : > { %5263 = vst [vmem:[#allocation44_spill] sm:$0xff] %v4539_v10  ;;  %5264 = vst [vmem:[#allocation45_spill] sm:$0xff] %v4542_v43  ;;  %v4563_v40 = vmax.f32 %v484_v52, %v3243_v2  ;;  %v4565_v62 = vmax.f32 %v483_v39, %v3244_v59  ;;  %v4567_v17 = vmax.f32 %v485_v31, %v3245_v63  ;;  %v3289_v7 = vrot.slane %v4371_v41, 9  ;;  %v5275_v31 = vld [vmem:[#allocation27_spill] sm:$0xff]  ;;  %v5276_v63 = vld [vmem:[#allocation25_spill] sm:$0xff] }
  0x75   : > { %5265 = vst [vmem:[#allocation46_spill] sm:$0xff] %v4545_v28  ;;  %5266 = vst [vmem:[#allocation47_spill] sm:$0xff] %v4548_v50  ;;  %v3290_v45 = vrot.slane %v4335_v25, 9  ;;  %v3291_v13 = vrot.slane %v4380_v56, 9  ;;  %v3292_v60 = vrot.slane %v4355_v23, 9  ;;  %v3293_v2 = vrot.slane %v4384_v5, 9 }
  0x76   : > { %5267 = vst [vmem:[#allocation48_spill] sm:$0xff] %v4551_v29  ;;  %5268 = vst [vmem:[#allocation49_spill] sm:$0xff] %v4553_v47  ;;  %v3294_v59 = vrot.slane %v4398_v20, 9  ;;  %v3295_v52 = vrot.slane %v5275_v31, 9  ;;  %v3296_v35 = vrot.slane %v5276_v63, 9  ;;  %v5277_v39 = vld [vmem:[#allocation28_spill] sm:$0xff]  ;;  %v1376_v50 = vmax.f32 %v4328_v18, %v3286_v49 }
  0x77   : > { %5269 = vst [vmem:[#allocation50_spill] sm:$0xff] %v4556_v34  ;;  %5270 = vst [vmem:[#allocation51_spill] sm:$0xff] %v4558_v33  ;;  %v3297_v15 = vrot.slane %v5277_v39, 9  ;;  %v3298_v8 = vrot.slane %v5278_v11, 9  ;;  %v3299_v32 = vrot.slane %v5279_v16, 9  ;;  %v3300_v27 = vrot.slane %v5280_v54, 9 }
  0x78   : > { %5271 = vst [vmem:[#allocation52_spill] sm:$0xff] %v4561_v1  ;;  %5272 = vst [vmem:[#allocation53_spill] sm:$0xff] %v4563_v40  ;;  %v3301_v26 = vrot.slane %v5281_v46, 9  ;;  %v3302_v57 = vrot.slane %v5282_v0, 9  ;;  %v3303_v44 = vrot.slane %v5283_v12, 9  ;;  %v3304_v51 = vrot.slane %v5284_v14, 9 }
  0x79   : > { %5273 = vst [vmem:[#allocation54_spill] sm:$0xff] %v4565_v62  ;;  %5274 = vst [vmem:[#allocation55_spill] sm:$0xff] %v4567_v17  ;;  %v5285_v58 = vld [vmem:[#allocation35_spill] sm:$0xff]  ;;  %v5286_v17 = vld [vmem:[#allocation33_spill] sm:$0xff]  ;;  %v1377_v28 = vmax.f32 %v4367_v36, %v3287_v9  ;;  %v1378_v43 = vmax.f32 %v4331_v19, %v3288_v42  ;;  %v1379_v10 = vmax.f32 %v4371_v41, %v3289_v7  ;;  %vm2263_vm14 = vcmask 1046532  }
  0x7a   : > { %v3305_v55 = vrot.slane %v5285_v58, 9  ;;  %v3306_v62 = vrot.slane %v5286_v17, 9  ;;  %v5287_v40 = vld [vmem:[#allocation37_spill] sm:$0xff]  ;;  %v5288_v33 = vld [vmem:[#allocation36_spill] sm:$0xff]  ;;  %v5289_v47 = vld [vmem:[#allocation38_spill] sm:$0xff]  ;;  %v1380_v53 = vmax.f32 %v4335_v25, %v3290_v45  ;;  %v1381_v48 = vmax.f32 %v4380_v56, %v3291_v13 }
  0x7b   : > { %v3307_v1 = vrot.slane %v5287_v40, 9  ;;  %v3308_v34 = vrot.slane %v5288_v33, 9  ;;  %v3309_v29 = vrot.slane %v5289_v47, 9  ;;  %v1382_v6 = vmax.f32 %v4355_v23, %v3292_v60  ;;  %vm4872_vm15 = vmor %vm2262_vm13, %vm2263_vm14 }
  0x7c   : > { %v1383_v21 = vmax.f32 %v4384_v5, %v3293_v2  ;;  %v1384_v3 = vmax.f32 %v4398_v20, %v3294_v59  ;;  %v1385_v24 = vmax.f32 %v5275_v31, %v3295_v52  ;;  %v1386_v18 = vmax.f32 %v5276_v63, %v3296_v35  ;;  %v5290_v63 = vld [vmem:[#allocation39_spill] sm:$0xff] }
  0x7d   : > { %v1387_v36 = vmax.f32 %v5277_v39, %v3297_v15  ;;  %v1388_v19 = vmax.f32 %v5278_v11, %v3298_v8  ;;  %v1389_v41 = vmax.f32 %v5279_v16, %v3299_v32  ;;  %v1390_v25 = vmax.f32 %v5280_v54, %v3300_v27  ;;  %v5301_v35 = vld [vmem:[#allocation49_spill] sm:$0xff] }
  0x7e   : > { %v1391_v56 = vmax.f32 %v5281_v46, %v3301_v26  ;;  %v1392_v23 = vmax.f32 %v5282_v0, %v3302_v57  ;;  %v1393_v5 = vmax.f32 %v5283_v12, %v3303_v44  ;;  %v1394_v20 = vmax.f32 %v5284_v14, %v3304_v51  ;;  %v5302_v39 = vld [vmem:[#allocation50_spill] sm:$0xff]  ;;  %v5303_v15 = vld [vmem:[#allocation51_spill] sm:$0xff]  ;;  %v5308_v0 = vld [vmem:[#allocation4_spill] sm:$0xff] }
  0x7f   : > { %v1395_v49 = vmax.f32 %v5285_v58, %v3305_v55  ;;  %v1396_v9 = vmax.f32 %v5286_v17, %v3306_v62  ;;  %v1397_v42 = vmax.f32 %v5287_v40, %v3307_v1  ;;  %v1398_v7 = vmax.f32 %v5288_v33, %v3308_v34  ;;  %v5291_v17 = vld [vmem:[#allocation2_spill] sm:$0xff]  ;;  %v5292_v40 = vld [vmem:[#allocation40_spill] sm:$0xff]  ;;  %v5293_v33 = vld [vmem:[#allocation41_spill] sm:$0xff] }
  0x80   : > { %v1399_v45 = vmax.f32 %v5289_v47, %v3309_v29  ;;  %v1440_v13 = vmax.f32 %v4503_v61, %v1376_v50  ;;  %v1441_v60 = vmax.f32 %v4506_v38, %v1377_v28  ;;  %v1442_v2 = vmax.f32 %v4509_v30, %v1378_v43  ;;  %v5294_v47 = vld [vmem:[#allocation42_spill] sm:$0xff]  ;;  %v5295_v50 = vld [vmem:[#allocation43_spill] sm:$0xff]  ;;  %v5296_v28 = vld [vmem:[#allocation44_spill] sm:$0xff] }
  0x81   : > { %v1443_v59 = vmax.f32 %v4512_v22, %v1379_v10  ;;  %v1444_v31 = vmax.f32 %v4515_v4, %v1380_v53  ;;  %v1445_v52 = vmax.f32 %v4518_v37, %v1381_v48  ;;  %v1446_v62 = vmax.f32 %v5290_v63, %v1382_v6  ;;  %v5297_v43 = vld [vmem:[#allocation45_spill] sm:$0xff]  ;;  %v5298_v10 = vld [vmem:[#allocation46_spill] sm:$0xff]  ;;  %v5299_v53 = vld [vmem:[#allocation47_spill] sm:$0xff] }
  0x82   : > { %v1447_v1 = vmax.f32 %v5291_v17, %v1383_v21  ;;  %v1448_v34 = vmax.f32 %v5292_v40, %v1384_v3  ;;  %v1449_v29 = vmax.f32 %v5293_v33, %v1385_v24  ;;  %v1450_v61 = vmax.f32 %v5294_v47, %v1386_v18  ;;  %v5300_v48 = vld [vmem:[#allocation48_spill] sm:$0xff]  ;;  %v5305_v16 = vld [vmem:[#allocation53_spill] sm:$0xff]  ;;  %v5306_v54 = vld [vmem:[#allocation54_spill] sm:$0xff] }
  0x83   : > { %v1451_v38 = vmax.f32 %v5295_v50, %v1387_v36  ;;  %v1452_v30 = vmax.f32 %v5296_v28, %v1388_v19  ;;  %v1453_v22 = vmax.f32 %v5297_v43, %v1389_v41  ;;  %v1454_v4 = vmax.f32 %v5298_v10, %v1390_v25  ;;  %v5304_v11 = vld [vmem:[#allocation52_spill] sm:$0xff]  ;;  %v5307_v46 = vld [vmem:[#allocation55_spill] sm:$0xff] }
  0x84   : > { %v1455_v37 = vmax.f32 %v5299_v53, %v1391_v56  ;;  %v1456_v6 = vmax.f32 %v5300_v48, %v1392_v23  ;;  %v1457_v21 = vmax.f32 %v5301_v35, %v1393_v5  ;;  %v1458_v3 = vmax.f32 %v5302_v39, %v1394_v20  ;;  %v5310_v48 = vld [vmem:[#allocation21_spill] sm:$0xff]  ;;  %v201_v35 = vld [vmem:[%s3866_s22 + $0x88] sm:$0xff] }
  0x85   : > { %v1459_v24 = vmax.f32 %v5303_v15, %v1395_v49  ;;  %v1460_v8 = vmax.f32 %v5304_v11, %v1396_v9  ;;  %v1461_v32 = vmax.f32 %v5305_v16, %v1397_v42  ;;  %v1462_v27 = vmax.f32 %v5306_v54, %v1398_v7 }
  0x86   : > { %v1463_v26 = vmax.f32 %v5307_v46, %v1399_v45  ;;  %v1595_v57 = vrot.slane %v1440_v13, %v5308_v0  ;;  %v1599_v12 = vrot.slane %v1441_v60, %v5308_v0  ;;  %v1603_v44 = vrot.slane %v1442_v2, %v5308_v0  ;;  %v200_v60 = vld [vmem:[%s3866_s22 + $0x80] sm:$0xff] }
  0x87   : > { %v1607_v14 = vrot.slane %v1443_v59, %v5308_v0  ;;  %v1611_v51 = vrot.slane %v1444_v31, %v5308_v0  ;;  %v1615_v58 = vrot.slane %v1445_v52, %v5308_v0  ;;  %v1619_v55 = vrot.slane %v1446_v62, %v5308_v0 }
  0x88   : > { %v1623_v18 = vrot.slane %v1447_v1, %v5308_v0  ;;  %v1627_v36 = vrot.slane %v1448_v34, %v5308_v0  ;;  %v1631_v19 = vrot.slane %v1449_v29, %v5308_v0  ;;  %v1635_v41 = vrot.slane %v1450_v61, %v5308_v0 }
  0x89   : > { %v1639_v25 = vrot.slane %v1451_v38, %v5308_v0  ;;  %v1643_v56 = vrot.slane %v1452_v30, %v5308_v0  ;;  %v1647_v23 = vrot.slane %v1453_v22, %v5308_v0  ;;  %v1651_v5 = vrot.slane %v1454_v4, %v5308_v0  ;;  %v5309_v38 = vld [vmem:[#allocation3_spill] sm:$0xff] }
  0x8a   : > { %v1659_v20 = vrot.slane %v1456_v6, %v5308_v0  ;;  %v1663_v49 = vrot.slane %v1457_v21, %v5308_v0  ;;  %v1667_v9 = vrot.slane %v1458_v3, %v5308_v0  ;;  %v1655_v42 = vrot.slane %v1455_v37, %v5308_v0  ;;  %v202_v21 = vld [vmem:[%s3866_s22 + $0x90] sm:$0xff] }
  0x8b   : > { %v1671_v7 = vrot.slane %v1459_v24, %v5308_v0  ;;  %v1675_v45 = vrot.slane %v1460_v8, %v5308_v0  ;;  %v1679_v13 = vrot.slane %v1461_v32, %v5308_v0  ;;  %v1683_v2 = vrot.slane %v1462_v27, %v5308_v0 }
  0x8c   : > { %v1830_v59 = vsel %vm1816_vm2, %v1599_v12, %v1595_v57  ;;  %v1837_v31 = vsel %vm1816_vm2, %v1631_v19, %v1627_v36  ;;  %v1844_v52 = vsel %vm1816_vm2, %v1663_v49, %v1659_v20  ;;  %v1687_v63 = vrot.slane %v1463_v26, %v5308_v0 }
  0x8d   : > { %v1831_v62 = vsel %vm1818_vm3, %v1603_v44, %v1830_v59  ;;  %v1838_v17 = vsel %vm1818_vm3, %v1635_v41, %v1837_v31  ;;  %v1845_v1 = vsel %vm1818_vm3, %v1667_v9, %v1844_v52  ;;  %v520_v29 = vcombine.high %v200_v60, %v200_v60 }
  0x8e   : > { %v1832_v40 = vsel %vm1820_vm4, %v1607_v14, %v1831_v62  ;;  %v1839_v34 = vsel %vm1820_vm4, %v1639_v25, %v1838_v17  ;;  %v1846_v33 = vsel %vm1820_vm4, %v1671_v7, %v1845_v1  ;;  %v4679_v28 = vrot.slane %v200_v60, %v5309_v38 }
  0x8f   : > { %v1833_v47 = vsel %vm1822_vm5, %v1611_v51, %v1832_v40  ;;  %v1840_v61 = vsel %vm1822_vm5, %v1643_v56, %v1839_v34  ;;  %v1847_v50 = vsel %vm1822_vm5, %v1675_v45, %v1846_v33  ;;  %v4685_v10 = vrot.slane %v520_v29, %v5309_v38  ;;  %v203_v56 = vld [vmem:[%s3866_s22 + $0x98] sm:$0xff] }
  0x90   : > { %v1834_v30 = vsel %vm1824_vm6, %v1615_v58, %v1833_v47  ;;  %v1841_v43 = vsel %vm1824_vm6, %v1647_v23, %v1840_v61  ;;  %v1848_v22 = vsel %vm1824_vm6, %v1679_v13, %v1847_v50  ;;  %v4692_v6 = vsel %vm2109_vm0, %v5310_v48, 0 }
  0x91   : > { %v1835_v4 = vsel %vm1826_vm7, %v1619_v55, %v1834_v30  ;;  %v1842_v53 = vsel %vm1826_vm7, %v1651_v5, %v1841_v43  ;;  %v1849_v37 = vsel %vm1826_vm7, %v1683_v2, %v1848_v22  ;;  %v4701_v24 = vcombine.high %v4679_v28, %v4679_v28 }
  0x92   : > { %v1836_v39 = vsel %vm1828_vm8, %v1623_v18, %v1835_v4  ;;  %v1843_v3 = vsel %vm1828_vm8, %v1655_v42, %v1842_v53  ;;  %v1850_v15 = vsel %vm1828_vm8, %v1687_v63, %v1849_v37  ;;  %v4705_v32 = vcombine.high %v4685_v10, %v4685_v10 }
  0x93   : > { %v1882_v11 = vrot.slane %v1836_v39, 7  ;;  %v1883_v8 = vrot.slane %v1843_v3, 7  ;;  %v1884_v16 = vrot.slane %v1850_v15, 7  ;;  %v537_v54 = vcombine.high %v201_v35, %v201_v35 }
  0x94   : > { %v4708_v27 = vrot.slane %v201_v35, %v5309_v38  ;;  %v554_v46 = vcombine.high %v202_v21, %v202_v21  ;;  %v4711_v26 = vrot.slane %v202_v21, %v5309_v38  ;;  %v571_v59 = vcombine.high %v203_v56, %v203_v56 }
  0x95   : > { %v4714_v57 = vsel %vm1898_vm1, 0.0, %v1882_v11  ;;  %v4717_v12 = vsel %vm1898_vm1, 0.0, %v1883_v8  ;;  %v4720_v44 = vsel %vm1898_vm1, 0.0, %v1884_v16  ;;  %v1910_v14 = vsel %vm1898_vm1, %v1882_v11, 0.0 }
  0x96   : > { %v1911_v51 = vsel %vm1898_vm1, %v1883_v8, 0.0  ;;  %v1912_v58 = vsel %vm1898_vm1, %v1884_v16, 0.0  ;;  %v4727_v55 = vpack.c.bf16 %v4714_v57, %v4714_v57  ;;  %v4729_v18 = vpack.c.bf16 %v1910_v14, %v1910_v14  ;;  %v5312_v8 = vld [vmem:[#allocation17_spill] sm:$0xff] }
  0x97   : > { %v4733_v36 = vpack.c.bf16 %v4717_v12, %v4717_v12  ;;  %v4735_v19 = vpack.c.bf16 %v1911_v51, %v1911_v51  ;;  %v4739_v41 = vpack.c.bf16 %v4720_v44, %v4720_v44  ;;  %v4741_v25 = vpack.c.bf16 %v1912_v58, %v1912_v58 }
  0x98   : > { %v1999_v23 = vshrl.u32 %v4727_v55, 16  ;;  %v2002_v5 = vshll.u32 %v4727_v55, 16  ;;  %v2008_v20 = vshll.u32 %v4729_v18, 16  ;;  %v4749_v49 = vpack.c.bf16 %v4717_v12, %v4714_v57 }
  0x99   : > { %v2013_v9 = vshrl.u32 %v4733_v36, 16  ;;  %v2016_v42 = vshll.u32 %v4733_v36, 16  ;;  %v2022_v7 = vshll.u32 %v4735_v19, 16  ;;  %v2027_v45 = vshrl.u32 %v4739_v41, 16 }
  0x9a   : > { %v2001_v13 = vrot.slane %v1999_v23, 4  ;;  %v2004_v60 = vrot.slane %v2002_v5, 5  ;;  %v2030_v2 = vshll.u32 %v4739_v41, 16  ;;  %v2010_v31 = vrot.slane %v2008_v20, 5 }
  0x9b   : > { %v2015_v52 = vrot.slane %v2013_v9, 4  ;;  %v2018_v63 = vrot.slane %v2016_v42, 5  ;;  %v2029_v62 = vrot.slane %v2027_v45, 4  ;;  %v2024_v1 = vrot.slane %v2022_v7, 5 }
  0x9c   : > { %v2005_v17 = vor.u32 %v2004_v60, %v2001_v13  ;;  %v2032_v40 = vrot.slane %v2030_v2, 5  ;;  %v2036_v34 = vshll.u32 %v4741_v25, 16  ;;  %v2275_v29 = vrot.slane %v4729_v18, 5  ;;  %v4790_v60 = vld [vmem:[%s5069_s1 + $0xc] sm:$0x3] }
  0x9d   : > { %v2019_v33 = vor.u32 %v2018_v63, %v2015_v52  ;;  %v551_v61 = vrot.slane %v537_v54, %v5309_v38  ;;  %v552_v22 = vcombine.high %v4708_v27, %v4708_v27  ;;  %v568_v37 = vrot.slane %v554_v46, %v5309_v38 }
  0x9e   : > { %v2006_v50 = vrot.slane %v2005_v17, 4  ;;  %v2033_v30 = vor.u32 %v2032_v40, %v2029_v62  ;;  %v2038_v43 = vrot.slane %v2036_v34, 5  ;;  %v569_v48 = vcombine.high %v4711_v26, %v4711_v26 }
  0x9f   : > { %v2020_v4 = vrot.slane %v2019_v33, 4  ;;  %v553_v53 = vcombine.high %v551_v61, %v551_v61  ;;  %v578_v3 = vrot.slane %v203_v56, %v5309_v38  ;;  %v585_v15 = vrot.slane %v571_v59, %v5309_v38 }
  0xa0   : > { %v2011_v21 = vsel %vm4272_vm11, %v2006_v50, %v2010_v31  ;;  %v2034_v39 = vrot.slane %v2033_v30, 4  ;;  %v570_v54 = vcombine.high %v568_v37, %v568_v37  ;;  %v3246_v14 = vrot.slane %v4679_v28, 9 }
  0xa1   : > { %v2025_v11 = vsel %vm4272_vm11, %v2020_v4, %v2024_v1  ;;  %v3404_v16 = vcombine.low %v5312_v8, %v2011_v21  ;;  %v586_v58 = vcombine.high %v578_v3, %v578_v3  ;;  %v587_v23 = vcombine.high %v585_v15, %v585_v15 }
  0xa2   : > { %v4775_v46 = vsel %vm4272_vm11, %v2034_v39, %v2038_v43  ;;  %v4777_v51 = vcombine.low %v2011_v21, %v2025_v11  ;;  %v3247_v5 = vrot.slane %v4701_v24, 9  ;;  %v3248_v20 = vrot.slane %v4685_v10, 9 }
  0xa3   : > { %v3405_v56 = vcombine.low %v2025_v11, %v4775_v46  ;;  %3577 = vmatprep.mubr.msk.bf16.mxu0 %vm2096_vm12, %v3404_v16  ;;  %v3249_v9 = vrot.slane %v4705_v32, 9  ;;  %v3250_v42 = vrot.slane %v4708_v27, 9  ;;  %v3251_v7 = vrot.slane %v552_v22, 9 }
  0xa4   : > { %3538 = vmatmul.mubr.msk.bf16.vlgmr.msra.gmra.mrb[0].mxu1 %vm2096_vm12, %v4777_v51  ;;  %v3252_v45 = vrot.slane %v551_v61, 9  ;;  %v3253_v13 = vrot.slane %v553_v53, 9  ;;  %v1144_v2 = vmax.f32 %v4679_v28, %v3246_v14  ;;  %v1145_v59 = vmax.f32 %v4701_v24, %v3247_v5 }
  0xa5   : > { %3578 = vmatmul.mubr.msk.bf16.vlgmr.msra.gmra.mrb[0].mxu0 %vm2096_vm12, %v3405_v56  ;;  %v1146_v31 = vmax.f32 %v4685_v10, %v3248_v20  ;;  %v1147_v52 = vmax.f32 %v4705_v32, %v3249_v9  ;;  %v1148_v63 = vmax.f32 %v4708_v27, %v3250_v42  ;;  %v1149_v62 = vmax.f32 %v552_v22, %v3251_v7  ;;  %v204_v20 = vld [vmem:[%s3866_s22 + $0xa0] sm:$0xff] }
  0xa6   : > { %3586 = vmatpush3.bf16.msra.mxu0 %v4692_v6  ;;  %v1150_v17 = vmax.f32 %v551_v61, %v3252_v45  ;;  %v1151_v1 = vmax.f32 %v553_v53, %v3253_v13  ;;  %v3310_v40 = vrot.slane %v4711_v26, 9  ;;  %v3311_v34 = vrot.slane %v569_v48, 9 }
  0xa7   : > { %v3312_v33 = vrot.slane %v568_v37, 9  ;;  %v3313_v50 = vrot.slane %v570_v54, 9  ;;  %3757 = vmatprep.subr.msk.bf16.mxu0 %vm2109_vm0, %v4790_v60  ;;  %v3314_v28 = vrot.slane %v578_v3, 9  ;;  %v3315_v24 = vrot.slane %v586_v58, 9 }
  0xa8   : > { %v3316_v10 = vrot.slane %v585_v15, 9  ;;  %v3317_v30 = vrot.slane %v587_v23, 9  ;;  %v1400_v32 = vmax.f32 %v4711_v26, %v3310_v40  ;;  %v1401_v6 = vmax.f32 %v569_v48, %v3311_v34  ;;  %v205_v26 = vld [vmem:[%s3866_s22 + $0xa8] sm:$0xff] }
  0xa9   : > { %v1402_v27 = vmax.f32 %v568_v37, %v3312_v33  ;;  %v1403_v61 = vmax.f32 %v570_v54, %v3313_v50  ;;  %v1404_v43 = vmax.f32 %v578_v3, %v3314_v28  ;;  %v1405_v22 = vmax.f32 %v586_v58, %v3315_v24  ;;  %v206_v54 = vld [vmem:[%s3866_s22 + $0xb0] sm:$0xff] }
  0xaa   : > { %v1406_v4 = vmax.f32 %v585_v15, %v3316_v10  ;;  %v1407_v53 = vmax.f32 %v587_v23, %v3317_v30  ;;  %v1464_v21 = vmax.f32 %v1144_v2, %v1400_v32  ;;  %v1465_v39 = vmax.f32 %v1145_v59, %v1401_v6 }
  0xab   : > { %v1466_v11 = vmax.f32 %v1146_v31, %v1402_v27  ;;  %v1467_v8 = vmax.f32 %v1147_v52, %v1403_v61  ;;  %v1468_v16 = vmax.f32 %v1148_v63, %v1404_v43  ;;  %v1469_v14 = vmax.f32 %v1149_v62, %v1405_v22  ;;  %v207_v31 = vld [vmem:[%s3866_s22 + $0xb8] sm:$0xff] }
  0xac   : > { %v1470_v56 = vmax.f32 %v1150_v17, %v1406_v4  ;;  %v1471_v5 = vmax.f32 %v1151_v1, %v1407_v53  ;;  %v1691_v48 = vrot.slane %v1464_v21, %v5308_v0  ;;  %v1695_v37 = vrot.slane %v1465_v39, %v5308_v0 }
  0xad   : > { %v1699_v3 = vrot.slane %v1466_v11, %v5308_v0  ;;  %v1703_v15 = vrot.slane %v1467_v8, %v5308_v0  ;;  %v1707_v58 = vrot.slane %v1468_v16, %v5308_v0  ;;  %v1711_v23 = vrot.slane %v1469_v14, %v5308_v0 }
  0xae   : > { %v1715_v9 = vrot.slane %v1470_v56, %v5308_v0  ;;  %v1719_v42 = vrot.slane %v1471_v5, %v5308_v0  ;;  %v1851_v7 = vsel %vm1816_vm2, %v1695_v37, %v1691_v48  ;;  %v588_v45 = vcombine.high %v204_v20, %v204_v20 }
  0xaf   : > { %v595_v13 = vrot.slane %v204_v20, %v5309_v38  ;;  %v605_v2 = vcombine.high %v205_v26, %v205_v26  ;;  %v1852_v59 = vsel %vm1818_vm3, %v1699_v3, %v1851_v7  ;;  %v612_v52 = vrot.slane %v205_v26, %v5309_v38 }
  0xb0   : > { %v622_v63 = vcombine.high %v206_v54, %v206_v54  ;;  %v629_v62 = vrot.slane %v206_v54, %v5309_v38  ;;  %v1853_v17 = vsel %vm1820_vm4, %v1703_v15, %v1852_v59  ;;  %v602_v1 = vrot.slane %v588_v45, %v5309_v38 }
  0xb1   : > { %v603_v40 = vcombine.high %v595_v13, %v595_v13  ;;  %v619_v34 = vrot.slane %v605_v2, %v5309_v38  ;;  %v1854_v33 = vsel %vm1822_vm5, %v1707_v58, %v1853_v17  ;;  %v620_v50 = vcombine.high %v612_v52, %v612_v52 }
  0xb2   : > { %v636_v28 = vrot.slane %v622_v63, %v5309_v38  ;;  %v637_v24 = vcombine.high %v629_v62, %v629_v62  ;;  %v1855_v10 = vsel %vm1824_vm6, %v1711_v23, %v1854_v33  ;;  %v604_v30 = vcombine.high %v602_v1, %v602_v1 }
  0xb3   : > { %v621_v32 = vcombine.high %v619_v34, %v619_v34  ;;  %v639_v6 = vcombine.high %v207_v31, %v207_v31  ;;  %v1856_v27 = vsel %vm1826_vm7, %v1715_v9, %v1855_v10  ;;  %v646_v43 = vrot.slane %v207_v31, %v5309_v38 }
  0xb4   : > { %v638_v61 = vcombine.high %v636_v28, %v636_v28  ;;  %v3254_v22 = vrot.slane %v595_v13, 9  ;;  %v1857_v4 = vsel %vm1828_vm8, %v1719_v42, %v1856_v27  ;;  %v3255_v21 = vrot.slane %v603_v40, 9 }
  0xb5   : > { %v653_v53 = vrot.slane %v639_v6, %v5309_v38  ;;  %v3256_v39 = vrot.slane %v602_v1, 9  ;;  %v1885_v11 = vrot.slane %v1857_v4, 7  ;;  %v654_v8 = vcombine.high %v646_v43, %v646_v43 }
  0xb6   : > { %v3257_v16 = vrot.slane %v604_v30, 9  ;;  %v3258_v14 = vrot.slane %v612_v52, 9  ;;  %v3259_v5 = vrot.slane %v620_v50, 9  ;;  %v3260_v20 = vrot.slane %v619_v34, 9 }
  0xb7   : > { %v655_v56 = vcombine.high %v653_v53, %v653_v53  ;;  %v3261_v26 = vrot.slane %v621_v32, 9  ;;  %v4831_v48 = vsel %vm1898_vm1, 0.0, %v1885_v11  ;;  %v1913_v37 = vsel %vm1898_vm1, %v1885_v11, 0.0 }
  0xb8   : > { %v1152_v3 = vmax.f32 %v595_v13, %v3254_v22  ;;  %v1153_v15 = vmax.f32 %v603_v40, %v3255_v21  ;;  %v4836_v38 = vpack.c.bf16 %v4831_v48, %v4831_v48  ;;  %v4838_v54 = vpack.c.bf16 %v1913_v37, %v1913_v37 }
  0xb9   : > { %v1154_v58 = vmax.f32 %v602_v1, %v3256_v39  ;;  %v1155_v23 = vmax.f32 %v604_v30, %v3257_v16  ;;  %v1156_v9 = vmax.f32 %v612_v52, %v3258_v14  ;;  %v1157_v42 = vmax.f32 %v620_v50, %v3259_v5 }
  0xba   : > { %v1158_v7 = vmax.f32 %v619_v34, %v3260_v20  ;;  %v1159_v45 = vmax.f32 %v621_v32, %v3261_v26  ;;  %v2041_v2 = vshrl.u32 %v4836_v38, 16  ;;  %v2044_v59 = vshll.u32 %v4836_v38, 16 }
  0xbb   : > { %v2050_v31 = vshll.u32 %v4838_v54, 16  ;;  %v3318_v13 = vrot.slane %v629_v62, 9  ;;  %v3319_v63 = vrot.slane %v637_v24, 9  ;;  %v3320_v17 = vrot.slane %v636_v28, 9 }
  0xbc   : > { %v3321_v40 = vrot.slane %v638_v61, 9  ;;  %v3322_v33 = vrot.slane %v646_v43, 9  ;;  %v2043_v10 = vrot.slane %v2041_v2, 4  ;;  %v2046_v6 = vrot.slane %v2044_v59, 5 }
  0xbd   : > { %v2052_v27 = vrot.slane %v2050_v31, 5  ;;  %v3323_v1 = vrot.slane %v654_v8, 9  ;;  %v3324_v30 = vrot.slane %v653_v53, 9  ;;  %v3325_v52 = vrot.slane %v655_v56, 9 }
  0xbe   : > { %v1408_v50 = vmax.f32 %v629_v62, %v3318_v13  ;;  %v1409_v34 = vmax.f32 %v637_v24, %v3319_v63  ;;  %v2047_v32 = vor.u32 %v2046_v6, %v2043_v10  ;;  %v1410_v22 = vmax.f32 %v636_v28, %v3320_v17  ;;  %v5316_v13 = vld [vmem:[#allocation10_spill] sm:$0xff] }
  0xbf   : > { %v1411_v4 = vmax.f32 %v638_v61, %v3321_v40  ;;  %v1412_v21 = vmax.f32 %v646_v43, %v3322_v33  ;;  %v1413_v39 = vmax.f32 %v654_v8, %v3323_v1  ;;  %v1414_v11 = vmax.f32 %v653_v53, %v3324_v30  ;;  %v5319_v30 = vld [vmem:[#allocation9_spill] sm:$0xff] }
  0xc0   : > { %v1415_v16 = vmax.f32 %v655_v56, %v3325_v52  ;;  %v1472_v14 = vmax.f32 %v1152_v3, %v1408_v50  ;;  %v2048_v5 = vrot.slane %v2047_v32, 4  ;;  %v1473_v20 = vmax.f32 %v1153_v15, %v1409_v34  ;;  %v4860_v3 = vld [vmem:[%s5069_s1 + $0x4] sm:$0x3] }
  0xc1   : > { %v1474_v26 = vmax.f32 %v1154_v58, %v1410_v22  ;;  %v1475_v37 = vmax.f32 %v1155_v23, %v1411_v4  ;;  %v1476_v2 = vmax.f32 %v1156_v9, %v1412_v21  ;;  %v1477_v59 = vmax.f32 %v1157_v42, %v1413_v39 }
  0xc2   : > { %v1478_v31 = vmax.f32 %v1158_v7, %v1414_v11  ;;  %v1479_v47 = vmax.f32 %v1159_v45, %v1415_v16  ;;  %v4845_v62 = vsel %vm4272_vm11, %v2048_v5, %v2052_v27  ;;  %v1723_v28 = vrot.slane %v1472_v14, %v5308_v0  ;;  %v5323_v14 = vld [vmem:[#allocation8_spill] sm:$0xff] }
  0xc3   : > { %v1727_v24 = vrot.slane %v1473_v20, %v5308_v0  ;;  %v1731_v61 = vrot.slane %v1474_v26, %v5308_v0  ;;  %v2283_v43 = vrot.slane %v4741_v25, 5  ;;  %v4853_v53 = vcombine.low %v4775_v46, %v4845_v62  ;;  %v5313_v25 = vld [vmem:[#allocation23_spill] sm:$0xff]  ;;  %v5324_v20 = vld [vmem:[#allocation20_spill] sm:$0xff] }
  0xc4   : > { %v1735_v8 = vrot.slane %v1475_v37, %v5308_v0  ;;  %v1739_v56 = vrot.slane %v1476_v2, %v5308_v0  ;;  %v1743_v15 = vrot.slane %v1477_v59, %v5308_v0  ;;  %v1747_v58 = vrot.slane %v1478_v31, %v5308_v0  ;;  %v5325_v37 = vld [vmem:[#allocation19_spill] sm:$0xff] }
  0xc5   : > { %v1858_v23 = vsel %vm1816_vm2, %v1727_v24, %v1723_v28  ;;  %v2195_v9 = vsel %vm2109_vm0, %v5313_v25, 0  ;;  %3541 = vmatprep.mubr.msk.bf16.mxu1 %vm2096_vm12, %v4853_v53  ;;  %v1751_v46 = vrot.slane %v1479_v47, %v5308_v0  ;;  %v3376_v63 = vrot.slane %v5316_v13, 9  ;;  %v5317_v0 = vld [vmem:[#allocation13_spill] sm:$0xff]  ;;  %v5326_v24 = vld [vmem:[#allocation15_spill] sm:$0xff] }
  0xc6   : > { %v1859_v42 = vsel %vm1818_vm3, %v1731_v61, %v1858_v23  ;;  %3546 = vmatpush3.bf16.msra.mxu1 %v2195_v9  ;;  %v3377_v17 = vrot.slane %v4727_v55, 9  ;;  %v3378_v40 = vrot.slane %v4733_v36, 9  ;;  %v5318_v47 = vshll.u32 %v5317_v0, 16 }
  0xc7   : > { %v1860_v7 = vsel %vm1820_vm4, %v1735_v8, %v1859_v42  ;;  %3753 = vmatprep.subr.msk.bf16.mxu1 %vm2109_vm0, %v4860_v3  ;;  %v3379_v6 = vrot.slane %v4739_v41, 9  ;;  %v4887_v27 = vpack.c.bf16 %v4831_v48, %v4720_v44  ;;  %v5320_v55 = vrot.slane %v5319_v30, 5  ;;  %v5328_v30 = vld [vmem:[#allocation22_spill] sm:$0xff] }
  0xc8   : > { %v2074_v33 = vrot.slane %v5318_v47, 5  ;;  %v1861_v10 = vsel %vm1822_vm5, %v1739_v56, %v1860_v7  ;;  %v2276_v52 = vsel %vm4872_vm15, %v3377_v17, %v2275_v29  ;;  %v5321_v50 = vrot.slane %v4735_v19, 5  ;;  %v5322_v19 = vld [vmem:[#allocation7_spill] sm:$0xff] }
  0xc9   : > { %v1862_v1 = vsel %vm1824_vm6, %v1743_v15, %v1861_v10  ;;  %v4894_v36 = vsel %vm4872_vm15, %v3376_v63, %v5320_v55  ;;  %v2284_v32 = vsel %vm4872_vm15, %v3379_v6, %v2283_v43  ;;  %v3380_v39 = vrot.slane %v4836_v38, 9  ;;  %v5327_v43 = vld [vmem:[#allocation14_spill] sm:$0xff] }
  0xca   : > { %v2280_v41 = vsel %vm4872_vm15, %v3378_v40, %v5321_v50  ;;  %v1863_v34 = vsel %vm1826_vm7, %v1747_v58, %v1862_v1  ;;  %v3414_v4 = vcombine.low %v4894_v36, %v2276_v52  ;;  %v2287_v29 = vrot.slane %v4838_v54, 5 }
  0xcb   : > { %v4907_v22 = vcombine.low %v2276_v52, %v2280_v41  ;;  %v1864_v21 = vsel %vm1828_vm8, %v1751_v46, %v1863_v34  ;;  %v3415_v18 = vcombine.low %v2280_v41, %v2284_v32  ;;  %v2267_v11 = vrot.slane %v5322_v19, 5 }
  0xcc   : > { %v1886_v16 = vrot.slane %v1864_v21, 7  ;;  %v3375_v5 = vrot.slane %v5323_v14, 9  ;;  %v2075_v26 = vor.u32 %v2074_v33, %v5324_v20  ;;  %v2078_v2 = vshll.u32 %v5325_v37, 16  ;;  %v5332_v14 = vld [vmem:[#allocation12_spill] sm:$0xff] }
  0xcd   : > { %v2288_v54 = vsel %vm4872_vm15, %v3380_v39, %v2287_v29  ;;  %v3412_v61 = vrot.slane %v5326_v24, 9  ;;  %v2609_v8 = vrot.slane %v5327_v43, 5  ;;  %v3466_v63 = vpack.c.bf16 %v4720_v44, %v4717_v12  ;;  %v5329_v44 = vld [vmem:[#allocation5_spill] sm:$0xff] }
  0xce   : > { %v4918_v59 = vsel %vm1898_vm1, 0.0, %v1886_v16  ;;  %v1914_v31 = vsel %vm1898_vm1, %v1886_v16, 0.0  ;;  %v4929_v56 = vsel %vm4872_vm15, %v3375_v5, %v2267_v11  ;;  %v4931_v15 = vcombine.low %v2284_v32, %v2288_v54  ;;  %v3434_v16 = vld [vmem:[%s5069_s1 + $0x10] sm:$0x3] }
  0xcf   : > { %v3457_v28 = vpack.c.bf16 %v4918_v59, %v4918_v59  ;;  %v3458_v38 = vpack.c.bf16 %v1914_v31, %v1914_v31  ;;  %v2076_v9 = vrot.slane %v2075_v26, 4  ;;  %v2080_v46 = vrot.slane %v2078_v2, 5 }
  0xd0   : > { %v3384_v42 = vcombine.low %v4929_v56, %v4894_v36  ;;  %v4939_v17 = vsel %vm4872_vm15, %v3412_v61, %v2609_v8  ;;  %v3467_v40 = vpack.c.bf16 %v4918_v59, %v4831_v48  ;;  %v5330_v36 = vld [vmem:[#allocation11_spill] sm:$0xff]  ;;  %v3382_v21 = vrot.slane %v5317_v0, 9  ;;  %v3392_v0 = vld [vmem:[%s5069_s1 + $0x6] sm:$0x3] }
  0xd1   : > { %v2055_v58 = vshrl.u32 %v3457_v28, 16  ;;  %v2058_v23 = vshll.u32 %v3457_v28, 16  ;;  %v2064_v25 = vshll.u32 %v3458_v38, 16  ;;  %v3435_v10 = vcombine.low %v4939_v17, %v4929_v56 }
  0xd2   : > { %v2081_v6 = vsel %vm4272_vm11, %v2076_v9, %v2080_v46  ;;  %v3461_v52 = vpack.c.bf16 %v5330_v36, %v5329_v44  ;;  %v3381_v41 = vrot.slane %v3457_v28, 9  ;;  %v2291_v34 = vrot.slane %v3458_v38, 5 }
  0xd3   : > { %v2057_v7 = vrot.slane %v2055_v58, 4  ;;  %v2060_v13 = vrot.slane %v2058_v23, 5  ;;  %v2066_v33 = vrot.slane %v2064_v25, 5  ;;  %v3407_v55 = vcombine.low %v2081_v6, %v5328_v30 }
  0xd4   : > { %v2292_v35 = vsel %vm4872_vm15, %v3381_v41, %v2291_v34  ;;  %v2713_v39 = vsel %vm2109_vm0, %v4790_v60, 0  ;;  %v2324_v29 = vsel %vm2109_vm0, %v4860_v3, 0  ;;  %v5331_v3 = vld [vmem:[#allocation6_spill] sm:$0xff]  ;;  %v2420_v11 = vsel %vm2109_vm0, %v3392_v0, 0 }
  0xd5   : > { %v2061_v47 = vor.u32 %v2060_v13, %v2057_v7  ;;  %v3416_v32 = vcombine.low %v2288_v54, %v2292_v35  ;;  %v3464_v19 = vpack.c.bf16 %v5331_v3, %v4918_v59  ;;  %v3471_v5 = vpack.c.bf16 %v5329_v44, %v5332_v14 }
  0xd6   : > { %v3465_v20 = vpack.c.bf16 %v4714_v57, %v5330_v36  ;;  %v3468_v57 = vpack.c.bf16 %v5332_v14, %v5331_v3  ;;  %vm2960_vm2 = vcmask 523264  }
  0xd7   : > { %v2062_v1 = vrot.slane %v2061_v47, 4 }
  0xd9   : > { %v2067_v12 = vsel %vm4272_vm11, %v2062_v1, %v2066_v33 }
  0xda   : > { %v3406_v50 = vcombine.low %v4845_v62, %v2067_v12  ;;  %v3362_v48 = vcombine.low %v2067_v12, %v2081_v6  ;;  %v2295_v62 = vrot.slane %v5325_v37, 5  ;;  %v5335_v37 = vmov 0.0  }
  0xdc   : > { %3581 = vmatprep.mubr.msk.bf16.mxu0 %vm2096_vm12, %v3406_v50  ;;  %3542 = vmatmul.mubr.msk.bf16.gmra.mrb[4].mxu1 %vm2096_vm12, %v3362_v48  ;;  %v2296_v60 = vsel %vm4872_vm15, %v3382_v21, %v2295_v62 }
  0xdd   : > { %3582 = vmatmul.mubr.msk.bf16.gmra.mrb[4].mxu0 %vm2096_vm12, %v3407_v55  ;;  %3547 = vmatprep.mubr.msk.bf16.mxu1 %vm2096_vm12, %v3461_v52 }
  0xde   : > { %3587 = vmatprep.mubr.msk.bf16.mxu0 %vm2096_vm12, %v3414_v4  ;;  %v3428_v4 = vld [vmem:[%s5069_s1 + $0xe] sm:$0x3] }
  0xdf   : > { %v2795_v45 = vsel %vm2109_vm0, %v3428_v4, 0 }
  0xe4   : > { %3548 = vmatmul.mubr.msk.bf16.vlgmr.msra.gmra.mrb[0].mxu1 %vm2096_vm12, %v4749_v49 }
  0xe5   : > { %3588 = vmatmul.mubr.msk.bf16.vlgmr.msra.gmra.mrb[0].mxu0 %vm2096_vm12, %v3415_v18  ;;  %3551 = vmatprep.mubr.msk.bf16.mxu1 %vm2096_vm12, %v4887_v27  ;;  %v3417_v18 = vcombine.low %v2296_v60, %v4939_v17 }
  0xe6   : > { %3596 = vmatpush3.bf16.msra.mxu0 %v2713_v39  ;;  %3591 = vmatprep.mubr.msk.bf16.mxu0 %vm2096_vm12, %v3416_v32  ;;  %v3817_v32 = vmov 1.0  }
  0xe7   : > { %3556 = vmatpush3.bf16.msra.mxu1 %v2324_v29  ;;  %3758 = vmatprep.subr.msk.bf16.mxu0 %vm2109_vm0, %v3428_v4 }
  0xe8   : > { %3754 = vmatprep.subr.msk.bf16.mxu1 %vm2109_vm0, %v3392_v0 }
  0xec   : > { %3552 = vmatmul.mubr.msk.bf16.gmra.mrb[4].mxu1 %vm2096_vm12, %v3464_v19 }
  0xed   : > { %3592 = vmatmul.mubr.msk.bf16.gmra.mrb[4].mxu0 %vm2096_vm12, %v3417_v18  ;;  %3557 = vmatprep.mubr.msk.bf16.mxu1 %vm2096_vm12, %v3384_v42 }
  0xee   : > { %3597 = vmatprep.mubr.msk.bf16.mxu0 %vm2096_vm12, %v4749_v49  ;;  %v3387_v49 = vcombine.low %v2292_v35, %v2296_v60 }
  0xf4   : > { %3558 = vmatmul.mubr.msk.bf16.vlgmr.msra.gmra.mrb[0].mxu1 %vm2096_vm12, %v4907_v22 }
  0xf5   : > { %3598 = vmatmul.mubr.msk.bf16.vlgmr.msra.gmra.mrb[0].mxu0 %vm2096_vm12, %v4887_v27  ;;  %3561 = vmatprep.mubr.msk.bf16.mxu1 %vm2096_vm12, %v4931_v15  ;;  %v2877_v27 = vsel %vm2109_vm0, %v3434_v16, 0 }
  0xf6   : > { %3606 = vmatpush3.bf16.msra.mxu0 %v2795_v45  ;;  %3601 = vmatprep.mubr.msk.bf16.mxu0 %vm2096_vm12, %v3464_v19 }
  0xf7   : > { %3566 = vmatpush3.bf16.msra.mxu1 %v2420_v11  ;;  %3759 = vmatprep.subr.msk.bf16.mxu0 %vm2109_vm0, %v3434_v16  ;;  %vm3816_vm0 = vmmov 0  }
  0xfc   : > { %3562 = vmatmul.mubr.msk.bf16.gmra.mrb[4].mxu1 %vm2096_vm12, %v3387_v49 }
  0xfd   : > { %3602 = vmatmul.mubr.msk.bf16.gmra.mrb[4].mxu0 %vm2096_vm12, %v3471_v5  ;;  %3567 = vmatprep.mubr.msk.bf16.mxu1 %vm2096_vm12, %v3465_v20 }
  0xfe   : > { %3607 = vmatprep.mubr.msk.bf16.mxu0 %vm2096_vm12, %v4777_v51  ;;  %v5333_v51 = vld [vmem:[#allocation18_spill] sm:$0xff] }
  0xff   : > { %v5334_v26 = vcombine.low %v5328_v30, %v5333_v51 }
 0x104   : > { %3568 = vmatmul.mubr.msk.bf16.vlgmr.msra.gmra.mrb[0].mxu1 %vm2096_vm12, %v3466_v63 }
 0x105   : > { %3608 = vmatmul.mubr.msk.bf16.vlgmr.msra.gmra.mrb[0].mxu0 %vm2096_vm12, %v4853_v53  ;;  %3571 = vmatprep.mubr.msk.bf16.mxu1 %vm2096_vm12, %v3467_v40  ;;  %v3815_v53 = vmov 0.0|0.0  }
 0x106   : > { %3616 = vmatpush3.bf16.msra.mxu0 %v2877_v27  ;;  %3611 = vmatprep.mubr.msk.bf16.mxu0 %vm2096_vm12, %v3362_v48 }
 0x107   : > { %3663 = vmatprep.subr.bf16.mxu1 %v3815_v53 }
 0x10c   : > { %3572 = vmatmul.mubr.msk.bf16.gmra.mrb[4].mxu1 %vm2096_vm12, %v3468_v57 }
 0x10d   : > { %3612 = vmatmul.mubr.msk.bf16.gmra.mrb[4].mxu0 %vm2096_vm12, %v5334_v26  ;;  %3641 = vmatprep.mubr.msk.f32.mxu1 %vm3816_vm0, %v5335_v37 }
 0x10e   : > { %3617 = vmatprep.mubr.msk.bf16.mxu0 %vm2096_vm12, %v4907_v22 }
 0x115   : > { %3618 = vmatmul.mubr.msk.bf16.vlgmr.msra.gmra.mrb[0].mxu0 %vm2096_vm12, %v4931_v15 }
 0x116   : > { %3621 = vmatprep.mubr.msk.bf16.mxu0 %vm2096_vm12, %v3387_v49 }
 0x11d   : > { %3622 = vmatmul.mubr.msk.bf16.gmra.mrb[4].mxu0 %vm2096_vm12, %v3435_v10 }
 0x1d7   : > { %v3569_v2 = vpop.f32.mrb[0].mxu1 }
 0x1d8   : > { %v2456_v59 = vpop.f32.mrb[1].mxu1 }
 0x1d9   : > { %v3570_v22 = vpop.f32.mrb[2].mxu1 }
 0x1da   : > { %v2459_v31 = vpop.f32.mrb[3].mxu1 }
 0x1df   : > { %v3573_v28 = vpop.f32.mrb[4].mxu1 }
 0x1e0   : > { %v2472_v38 = vpop.f32.mrb[5].mxu1 }
 0x1e1   : > { %v3574_v54 = vpop.f32.mrb[6].mxu1 }
 0x1e2   : > { %v2475_v24 = vpop.f32.mrb[7].mxu1 }
 0x1e8   : > { %v3619_v61 = vpop.f32.mrb[0].mxu0 }
 0x1e9   : > { %v3687_v43 = vadd.f32 %v3619_v61, %v3569_v2  ;;  %v2913_v8 = vpop.f32.mrb[1].mxu0 }
 0x1ea   : > { %v3688_v56 = vadd.f32 %v2913_v8, %v2456_v59  ;;  %v3620_v15 = vpop.f32.mrb[2].mxu0 }
 0x1eb   : > { %2954 = vst [vmem:[%s5041_s16 + $0x10] sm:$0xff] %v3687_v43  ;;  %v3689_v58 = vadd.f32 %v3620_v15, %v3570_v22  ;;  %v2916_v23 = vpop.f32.mrb[3].mxu0  ;;  %v3036_v9 = vmul.f32 %v3687_v43, %v3687_v43 }
 0x1ec   : > { %2952 = vst [vmem:[%s5041_s16] sm:$0xff] %v3688_v56  ;;  %v3690_v25 = vadd.f32 %v2916_v23, %v2459_v31  ;;  %v3034_v7 = vmul.f32 %v3688_v56, %v3688_v56 }
 0x1ed   : > { %2955 = vst [vmem:[%s5041_s16 + $0x18] sm:$0xff] %v3689_v58  ;;  %v3667_v46 = vpack.c.bf16 %v3689_v58, %v3687_v43  ;;  %v3037_v42 = vmul.f32 %v3689_v58, %v3689_v58 }
 0x1ee   : > { %2953 = vst [vmem:[%s5041_s16 + $0x8] sm:$0xff] %v3690_v25  ;;  %v3664_v13 = vpack.c.bf16 %v3690_v25, %v3688_v56  ;;  %v3035_v63 = vmul.f32 %v3690_v25, %v3690_v25 }
 0x1ef   : > { %v3679_v17 = vpack.c.bf16 %v3037_v42, %v3036_v9 }
 0x1f0   : > { %v3676_v40 = vpack.c.bf16 %v3035_v63, %v3034_v7  ;;  %v3623_v47 = vpop.f32.mrb[4].mxu0  ;;  %3665 = vmatpush3.bf16.msra.mxu1 %v3664_v13 }
 0x1f1   : > { %v3691_v33 = vadd.f32 %v3623_v47, %v3573_v28  ;;  %v2929_v10 = vpop.f32.mrb[5].mxu0  ;;  %3666 = vmatprep.subr.bf16.mxu1 %v3815_v53 }
 0x1f2   : > { %v3692_v6 = vadd.f32 %v2929_v10, %v2472_v38  ;;  %v3624_v1 = vpop.f32.mrb[6].mxu0 }
 0x1f3   : > { %2958 = vst [vmem:[%s5041_s16 + $0x30] sm:$0xff] %v3691_v33  ;;  %v3693_v30 = vadd.f32 %v3624_v1, %v3574_v54  ;;  %v2932_v55 = vpop.f32.mrb[7].mxu0  ;;  %v3040_v44 = vmul.f32 %v3691_v33, %v3691_v33 }
 0x1f4   : > { %2956 = vst [vmem:[%s5041_s16 + $0x20] sm:$0xff] %v3692_v6  ;;  %v3694_v12 = vadd.f32 %v2932_v55, %v2475_v24  ;;  %3668 = vmatpush3.bf16.msra.mxu1 %v3667_v46  ;;  %v3038_v50 = vmul.f32 %v3692_v6, %v3692_v6 }
 0x1f5   : > { %2959 = vst [vmem:[%s5041_s16 + $0x38] sm:$0xff] %v3693_v30  ;;  %v3673_v36 = vpack.c.bf16 %v3693_v30, %v3691_v33  ;;  %v3041_v52 = vmul.f32 %v3693_v30, %v3693_v30  ;;  %3669 = vmatprep.subr.bf16.mxu1 %v3815_v53 }
 0x1f6   : > { %2957 = vst [vmem:[%s5041_s16 + $0x28] sm:$0xff] %v3694_v12  ;;  %v3670_v48 = vpack.c.bf16 %v3694_v12, %v3692_v6  ;;  %v3039_v41 = vmul.f32 %v3694_v12, %v3694_v12 }
 0x1f7   : > { %v3685_v34 = vpack.c.bf16 %v3041_v52, %v3040_v44 }
 0x1f8   : > { %v3682_v35 = vpack.c.bf16 %v3039_v41, %v3038_v50  ;;  %3671 = vmatpush3.bf16.msra.mxu1 %v3670_v48 }
 0x1f9   : > { %3672 = vmatprep.subr.bf16.mxu1 %v3815_v53 }
 0x1fc   : > { %3674 = vmatpush3.bf16.msra.mxu1 %v3673_v36 }
 0x1fd   : > { %3675 = vmatprep.subr.bf16.mxu1 %v3815_v53 }
 0x1ff   : > { %3642 = vmatmul.mubr.msk.f32.vlgmr.msra.gmra.mrb[8].mxu1 %vm2960_vm2, %v3817_v32 }
 0x200   : > { %3677 = vmatpush3.bf16.msra.mxu1 %v3676_v40  ;;  %3660 = vmatprep.mubr.msk.f32.mxu1 %vm3816_vm0, %v5335_v37 }
 0x201   : > { %3678 = vmatprep.subr.bf16.mxu1 %v3815_v53 }
 0x204   : > { %3680 = vmatpush3.bf16.msra.mxu1 %v3679_v17 }
 0x205   : > { %3681 = vmatprep.subr.bf16.mxu1 %v3815_v53 }
 0x208   : > { %3683 = vmatpush3.bf16.msra.mxu1 %v3682_v35 }
 0x209   : > { %3684 = vmatprep.subr.bf16.mxu1 %v3815_v53 }
 0x20c   : > { %3686 = vmatpush3.bf16.msra.mxu1 %v3685_v34 }
 0x20f   : > { %3661 = vmatmul.mubr.msk.f32.vlgmr.msra.gmra.mrb[10].mxu1 %vm2960_vm2, %v3817_v32 }
 0x2d2   : > { %v3030_v21 = vpop.f32.mrb[8].mxu1 }
 0x2d3   : > { %v3643_v62 = vpop.f32.mrb[9].mxu1 }
 0x2e2   : > { %v3108_v39 = vpop.f32.mrb[10].mxu1 }
 0x2e3   : > { %v3113_v29 = vrot.slane %v3108_v39, 7  ;;  %v3662_v4 = vpop.f32.mrb[11].mxu1 }
 0x2e5   : > { %v3115_v0 = vsel %vm1898_vm1, %v3030_v21, %v3113_v29 }
 0x2e6   : > { %3116 = vst [vmem:[%s182_s20] sm:$0x3] %v3115_v0 }
 0x2e7 PF: > { %s14_s12 = sadd.s32 1, %s3811_s12  }
 0x2e8   : > { %p11_p5 = scmp.ge.s32.totalorder %s14_s12, 4  }
 0x2ea   :  { %13 = sbr.rel (!%p11_p5) target bundleno = 1 (0x1), region = 78 }

</bundles_post_ra>
